<compile_context>
chip_gen: v5e
topology: v5e:2x2
jax: 0.10.0
libtpu: 0.0.40
codegen_flags: <defaults>
</compile_context>

<pallas_src>
import functools
import math

import numpy as np
import jax
import jax.numpy as jnp
from jax.experimental import pallas as pl
from jax.experimental.pallas import tpu as pltpu


# ----------------------------------------------------------------------------
# Pallas kernel: one grid step == t_block wave-equation time steps
# ----------------------------------------------------------------------------
def _wave_block_kernel(ws_ref, prm_ref, us_ref,
                       u_ref, v_ref, up_ref, vp_ref,
                       *, dt, nx, t_block, a0dt, a0a1, a0a2, use_bc_rows):
    blk = pl.program_id(0)

    # Initial wavefield H = [0, 0, 0, 0]
    @pl.when(blk == 0)
    def _():
        zero = jnp.zeros((1, nx), jnp.float32)
        u_ref[...] = zero
        v_ref[...] = zero
        up_ref[...] = zero
        vp_ref[...] = zero

    # Invariant parameter rows, packed into one (8, nx) tile (hoisted loads).
    s_m2 = prm_ref[0:1, :]      # coeff of w[i-2]  (boundary-only row)
    s_m1 = prm_ref[1:2, :]      # coeff of w[i-1]
    s_0 = prm_ref[2:3, :]       # coeff of w[i]
    s_p1 = prm_ref[3:4, :]      # coeff of w[i+1]
    s_p2 = prm_ref[4:5, :]      # coeff of w[i+2]  (boundary-only row)
    base_f = prm_ref[5:6, :]    # point-source interpolation * C**2/dx
    m_int = prm_ref[6:7, :]     # 1.0 on interior lanes
    m_bnd = prm_ref[7:8, :]     # 1.0 on the two boundary lanes

    dt_c = jnp.float32(dt)
    a0dt_c = jnp.float32(a0dt)
    a0a1_c = jnp.float32(a0a1)
    a0a2_c = jnp.float32(a0a2)

    def step(t, carry):
        u, v, up, vp = carry
        # Ricker amplitude for this time step (scalar read from SMEM).
        src = ws_ref[blk * t_block + t]
        f = src * base_f
        # Linearity: stencil(u) + dt*stencil(v) == stencil(u + dt*v)
        w = u + dt_c * v
        # 3-diagonal interior stencil (wrap-around killed by zeroed
        # boundary columns of Kxx); rolls use non-negative shifts only.
        k = (pltpu.roll(w, shift=1, axis=1) * s_m1
             + w * s_0
             + pltpu.roll(w, shift=nx - 1, axis=1) * s_p1)
        if use_bc_rows:
            # Second-neighbour rows feed only the two boundary lanes and
            # implement the one-sided (non-fixed) boundary stencil Kx.
            k = k + (pltpu.roll(w, shift=2, axis=1) * s_m2
                     + pltpu.roll(w, shift=nx - 2, axis=1) * s_p2)
        v_in = a0dt_c * (f + k) + a0a1_c * v + a0a2_c * vp
        v_new = m_int * v_in + m_bnd * k     # vN[0] = k[0], vN[-1] = k[-1]
        u_new = a0dt_c * v_new + a0a1_c * u + a0a2_c * up
        # us.append(H[0])
        us_ref[pl.ds(t, 1), :] = u_new
        return (u_new, v_new, u, v)

    carry = (u_ref[...], v_ref[...], up_ref[...], vp_ref[...])
    u, v, up, vp = jax.lax.fori_loop(0, t_block, step, carry, unroll=True)

    # Persist state for the next time block.
    u_ref[...] = u
    v_ref[...] = v
    up_ref[...] = up
    vp_ref[...] = vp


def wave1d_propagate_pallas(ws, A, params, *, dt, fixed_bc, t_block=32):
    nt = int(ws.shape[0])
    nx = int(params.shape[1])
    t_block = max(8, (int(t_block) // 8) * 8)      # sublane-dense output slabs
    n_blocks = pl.cdiv(nt, t_block)
    nt_pad = n_blocks * t_block
    if nt_pad != nt:
        # Pad the source wavelet with zeros; extra rows are discarded below.
        ws = jnp.concatenate([ws, jnp.zeros((nt_pad - nt,), ws.dtype)])

    a0, a1, a2 = float(A[0]), float(A[1]), float(A[2])
    kernel = functools.partial(
        _wave_block_kernel, dt=float(dt), nx=nx, t_block=t_block,
        a0dt=a0 * float(dt), a0a1=a0 * a1, a0a2=a0 * a2,
        use_bc_rows=not fixed_bc)

    grid_spec = pltpu.PrefetchScalarGridSpec(
        num_scalar_prefetch=0,
        grid=(n_blocks,),
        in_specs=[
            pl.BlockSpec(memory_space=pltpu.MemorySpace.SMEM),    # ws (nt_pad,)
            pl.BlockSpec((8, nx), lambda b: (0, 0)),              # packed params
        ],
        out_specs=pl.BlockSpec((t_block, nx), lambda b: (b, 0)),  # us slab
        scratch_shapes=[pltpu.VMEM((1, nx), jnp.float32),   # uC
                        pltpu.VMEM((1, nx), jnp.float32),   # vC
                        pltpu.VMEM((1, nx), jnp.float32),   # uP
                        pltpu.VMEM((1, nx), jnp.float32)],  # vP
    )
    us = pl.pallas_call(
        kernel,
        out_shape=jax.ShapeDtypeStruct((nt_pad, nx), jnp.float32),
        grid_spec=grid_spec,
        compiler_params=pltpu.CompilerParams(
            dimension_semantics=("arbitrary",)),   # serial time recurrence
    )(ws, params)
    return us[:nt]


# ----------------------------------------------------------------------------
# Glue: parameter setup (wave_matrices / ricker / Point_Source) in plain JAX
# ----------------------------------------------------------------------------
def wave_matrices(C, config):
    dx = config['dx']
    nx = config['nx']
    fixed_bc = config['bc'] == 'fixed'
    spc_ctr = jnp.array([1.0, -2.0, 1.0], jnp.float32)
    spc_fwd = jnp.array([-3.0 / 2.0, 2.0, -1.0 / 2.0], jnp.float32)
    cwgt = (C / dx) ** 2
    kxx = spc_ctr[:, None] * cwgt[None, :]
    kxx = kxx.at[:, 0].set(0.0).at[:, -1].set(0.0)
    kx = jnp.zeros((3, nx), jnp.float32)
    if not fixed_bc:
        kx = kx.at[:, 0].set(spc_fwd * C[0] / dx)
        kx = kx.at[:, -1].set(spc_fwd[::-1] * C[-1] / dx)
    tim_bak = jnp.array([3.0 / 2.0, -2.0, 1.0 / 2.0], jnp.float32)
    A = jnp.stack([1.0 / tim_bak[0], -tim_bak[1], -tim_bak[2]]).astype(jnp.float32)
    M = jnp.zeros((nx,), jnp.float32).at[1:-1].set(1.0)
    return M, A, kx, kxx


def ricker(t, config):
    nu0 = config['nu0']
    sigma_inv = math.pi * nu0 * math.sqrt(2.0)
    t0 = 6.0 / sigma_inv
    tdel = t - t0
    expt = (math.pi * nu0 * tdel) ** 2
    w = (1.0 - 2.0 * expt) * jnp.exp(-expt)
    w = jnp.where(jnp.abs(w) < 1e-7, 0.0, w)
    return w.astype(jnp.float32)


def point_source_params(config):
    nx = config['nx']
    dx = config['dx']
    xbgn, _ = config['x_limits']
    xpos = config['x_s'] - xbgn
    ixs = max(1, int(np.ceil(xpos / dx)))
    frac = ixs - xpos / dx
    frac = 0.0 if ixs == 1 else frac
    frac = 1.0 if ixs == nx - 1 else frac
    return ixs, float(frac)


def build_packed_params(C, kx, kxx, config):
    """Packs 5 stencil rows + source vector + 2 boundary masks into (8, nx)."""
    nx = config['nx']
    dx = config['dx']
    fixed_bc = config['bc'] == 'fixed'
    # 5-diagonal stencil: rows are coefficients of w[i-2], w[i-1], w[i], w[i+1], w[i+2]
    S = jnp.zeros((5, nx), jnp.float32)
    S = S.at[1].set(kxx[0]).at[2].set(kxx[1]).at[3].set(kxx[2])
    if not fixed_bc:
        # Fold the one-sided boundary stencils Kx[:,0] / Kx[:,-1] into rows:
        #   k[0]    = w[0]*Kx[0,0]  + w[1]*Kx[1,0]   + w[2]*Kx[2,0]
        #   k[nx-1] = w[-3]*Kx[0,-1]+ w[-2]*Kx[1,-1] + w[-1]*Kx[2,-1]
        S = S.at[2, 0].set(kx[0, 0])
        S = S.at[3, 0].set(kx[1, 0])
        S = S.at[4, 0].set(kx[2, 0])
        S = S.at[0, nx - 1].set(kx[0, -1])
        S = S.at[1, nx - 1].set(kx[1, -1])
        S = S.at[2, nx - 1].set(kx[2, -1])
    ixs, frac = point_source_params(config)
    fscale = (C.astype(jnp.float32) ** 2) / dx
    base_f = (jnp.zeros((nx,), jnp.float32)
              .at[ixs].set(1.0 - frac)
              .at[ixs - 1].set(frac)) * fscale
    m_bnd = jnp.zeros((nx,), jnp.float32).at[0].set(1.0).at[nx - 1].set(1.0)
    m_int = 1.0 - m_bnd
    return jnp.concatenate(
        [S, base_f[None, :], m_int[None, :], m_bnd[None, :]], axis=0)


def wave1d_propagator_forward(C, config, *, t_block=32):
    """Equivalent of Wave1D_Propagator.forward(): returns (us, trc)."""
    nt, dt = config['nt'], config['dt']
    fixed_bc = config['bc'] == 'fixed'

    _, A, kx, kxx = wave_matrices(C, config)
    ts = jnp.linspace(0.0, config['T'], nt)
    ws = ricker(ts, config)
    params = build_packed_params(C, kx, kxx, config)

    us = wave1d_propagate_pallas(ws, A, params, dt=dt, fixed_bc=fixed_bc,
                                 t_block=t_block)

    nrec = len(config['x_r'])
    # TODO(synk): config['rcv'].sample is an external receiver object whose
    # implementation is not given in the reference; with nrec == 0 the torch
    # module returns trc = None, which we reproduce here.
    trc = None if nrec == 0 else None
    return us, trc


# ----------------------------------------------------------------------------
# Pure-numpy reference of the torch time loop (for correctness checking)
# ----------------------------------------------------------------------------
def _reference_propagate(ws, A, Kxx, Kx, base_f, dt, nt, nx, fixed_bc):
    ws = np.asarray(ws, np.float32)
    A = np.asarray(A, np.float32)
    Kxx = np.asarray(Kxx, np.float32)
    Kx = np.asarray(Kx, np.float32)
    base_f = np.asarray(base_f, np.float32)
    dt = np.float32(dt)
    u = np.zeros(nx, np.float32)
    v = np.zeros(nx, np.float32)
    up = np.zeros(nx, np.float32)
    vp = np.zeros(nx, np.float32)
    us = []
    for it in range(nt):
        f = ws[it] * base_f
        k = (np.roll(u, 1) * Kxx[0] + u * Kxx[1] + np.roll(u, -1) * Kxx[2]) + \
            dt * (np.roll(v, 1) * Kxx[0] + v * Kxx[1] + np.roll(v, -1) * Kxx[2])
        if fixed_bc:
            k[0] = 0.0
            k[-1] = 0.0
        else:
            k[0] = np.sum(u[:3] * Kx[:, 0]) + dt * np.sum(v[:3] * Kx[:, 0])
            k[-1] = np.sum(u[-3:] * Kx[:, -1]) + dt * np.sum(v[-3:] * Kx[:, -1])
        vN = A[0] * (dt * (f + k) + A[1] * v + A[2] * vp)
        vN[0] = k[0]
        vN[-1] = k[-1]
        uN = A[0] * (dt * vN + A[1] * u + A[2] * up)
        up, vp, u, v = u, v, uN, vN
        us.append(uN)
    return np.stack(us, axis=0)


# ----------------------------------------------------------------------------
if __name__ == "__main__":
    nx = 128
    nt = 40           # not a multiple of t_block -> exercises the padding path
    dx = 10.0
    dt = 0.004
    config = {
        'nx': nx,
        'nt': nt,
        'dx': dx,
        'dt': dt,
        'T': dt * (nt - 1),
        'x_limits': (0.0, dx * (nx - 1)),
        'bc': 'absorbing',        # exercises the non-fixed boundary path
        'nu0': 25.0,
        'x_s': 315.0,
        'x_r': [],                # no receivers -> trc is None
        'rcv': None,
    }

    key = jax.random.PRNGKey(0)
    C = 1500.0 + 100.0 * jax.random.uniform(key, (nx,), dtype=jnp.float32)

    us, trc = wave1d_propagator_forward(C, config, t_block=16)
    us = jax.block_until_ready(us)

    # Correctness check against a plain-numpy transcription of the torch loop.
    _, A, kx, kxx = wave_matrices(C, config)
    ts = jnp.linspace(0.0, config['T'], nt)
    ws = ricker(ts, config)
    ixs, frac = point_source_params(config)
    base_f = np.zeros(nx, np.float32)
    base_f[ixs] = 1.0 - frac
    base_f[ixs - 1] = frac
    base_f = base_f * (np.asarray(C, np.float32) ** 2 / dx)
    ref = _reference_propagate(ws, A, kxx, kx, base_f, dt, nt, nx,
                               fixed_bc=(config['bc'] == 'fixed'))

    assert us.shape == (nt, nx)
    assert trc is None
    scale = float(np.max(np.abs(ref))) + 1.0
    np.testing.assert_allclose(np.asarray(us), ref,
                               rtol=5e-4, atol=1e-4 * scale)

    print("KERNEL_OK")
</pallas_src>

<mosaic_0001>
module attributes {stable_mosaic.version = 11 : i64} {
  func.func @_wave_block_kernel(%arg0: i32, %arg1: memref<48xf32, #tpu.memory_space<smem>>, %arg2: memref<8x128xf32, #tpu.memory_space<vmem>>, %arg3: memref<16x128xf32, #tpu.memory_space<vmem>>, %arg4: memref<1x128xf32, #tpu.memory_space<vmem>>, %arg5: memref<1x128xf32, #tpu.memory_space<vmem>>, %arg6: memref<1x128xf32, #tpu.memory_space<vmem>>, %arg7: memref<1x128xf32, #tpu.memory_space<vmem>>) attributes {dimension_semantics = [#tpu.dimension_semantics<arbitrary>], iteration_bounds = array<i64: 3>, scalar_prefetch = 0 : i64, scratch_operands = 4 : i64, tpu.core_type = #tpu.core_type<tc>, window_params = [{transform_indices = @transform_0, window_bounds = array<i64: 48>}, {pipeline_mode = #tpu.pipeline_mode<synchronous>, transform_indices = @transform_1, window_bounds = array<i64: 8, 128>}, {transform_indices = @transform_2, window_bounds = array<i64: 16, 128>}]} {
    %c0_i32 = arith.constant 0 : i32
    %0 = arith.cmpi eq, %arg0, %c0_i32 : i32
    %1 = arith.extui %0 : i1 to i32
    %c0_i32_0 = arith.constant 0 : i32
    %2 = arith.cmpi ne, %1, %c0_i32_0 : i32
    scf.if %2 {
      %cst_123 = arith.constant 0.000000e+00 : f32
      %723 = vector.broadcast %cst_123 : f32 to vector<1x128xf32>
      %c0_124 = arith.constant 0 : index
      %c0_125 = arith.constant 0 : index
      %724 = vector.load %arg4[%c0_124, %c0_125] : memref<1x128xf32, #tpu.memory_space<vmem>>, vector<1x128xf32>
      tpu.vector_store %arg4[%c0_124, %c0_125], %723 {strides = array<i32>} : memref<1x128xf32, #tpu.memory_space<vmem>>, vector<1x128xf32>,
      %c0_126 = arith.constant 0 : index
      %c0_127 = arith.constant 0 : index
      %725 = vector.load %arg5[%c0_126, %c0_127] : memref<1x128xf32, #tpu.memory_space<vmem>>, vector<1x128xf32>
      tpu.vector_store %arg5[%c0_126, %c0_127], %723 {strides = array<i32>} : memref<1x128xf32, #tpu.memory_space<vmem>>, vector<1x128xf32>,
      %c0_128 = arith.constant 0 : index
      %c0_129 = arith.constant 0 : index
      %726 = vector.load %arg6[%c0_128, %c0_129] : memref<1x128xf32, #tpu.memory_space<vmem>>, vector<1x128xf32>
      tpu.vector_store %arg6[%c0_128, %c0_129], %723 {strides = array<i32>} : memref<1x128xf32, #tpu.memory_space<vmem>>, vector<1x128xf32>,
      %c0_130 = arith.constant 0 : index
      %c0_131 = arith.constant 0 : index
      %727 = vector.load %arg7[%c0_130, %c0_131] : memref<1x128xf32, #tpu.memory_space<vmem>>, vector<1x128xf32>
      tpu.vector_store %arg7[%c0_130, %c0_131], %723 {strides = array<i32>} : memref<1x128xf32, #tpu.memory_space<vmem>>, vector<1x128xf32>,
    } else {
    }
    %c0 = arith.constant 0 : index
    %c0_1 = arith.constant 0 : index
    %3 = vector.load %arg2[%c0, %c0_1] : memref<8x128xf32, #tpu.memory_space<vmem>>, vector<1x128xf32>
    %c1 = arith.constant 1 : index
    %c0_2 = arith.constant 0 : index
    %4 = vector.load %arg2[%c1, %c0_2] : memref<8x128xf32, #tpu.memory_space<vmem>>, vector<1x128xf32>
    %c2 = arith.constant 2 : index
    %c0_3 = arith.constant 0 : index
    %5 = vector.load %arg2[%c2, %c0_3] : memref<8x128xf32, #tpu.memory_space<vmem>>, vector<1x128xf32>
    %c3 = arith.constant 3 : index
    %c0_4 = arith.constant 0 : index
    %6 = vector.load %arg2[%c3, %c0_4] : memref<8x128xf32, #tpu.memory_space<vmem>>, vector<1x128xf32>
    %c4 = arith.constant 4 : index
    %c0_5 = arith.constant 0 : index
    %7 = vector.load %arg2[%c4, %c0_5] : memref<8x128xf32, #tpu.memory_space<vmem>>, vector<1x128xf32>
    %c5 = arith.constant 5 : index
    %c0_6 = arith.constant 0 : index
    %8 = vector.load %arg2[%c5, %c0_6] : memref<8x128xf32, #tpu.memory_space<vmem>>, vector<1x128xf32>
    %c6 = arith.constant 6 : index
    %c0_7 = arith.constant 0 : index
    %9 = vector.load %arg2[%c6, %c0_7] : memref<8x128xf32, #tpu.memory_space<vmem>>, vector<1x128xf32>
    %c7 = arith.constant 7 : index
    %c0_8 = arith.constant 0 : index
    %10 = vector.load %arg2[%c7, %c0_8] : memref<8x128xf32, #tpu.memory_space<vmem>>, vector<1x128xf32>
    %c0_9 = arith.constant 0 : index
    %c0_10 = arith.constant 0 : index
    %11 = vector.load %arg4[%c0_9, %c0_10] : memref<1x128xf32, #tpu.memory_space<vmem>>, vector<1x128xf32>
    %c0_11 = arith.constant 0 : index
    %c0_12 = arith.constant 0 : index
    %12 = vector.load %arg5[%c0_11, %c0_12] : memref<1x128xf32, #tpu.memory_space<vmem>>, vector<1x128xf32>
    %c0_13 = arith.constant 0 : index
    %c0_14 = arith.constant 0 : index
    %13 = vector.load %arg6[%c0_13, %c0_14] : memref<1x128xf32, #tpu.memory_space<vmem>>, vector<1x128xf32>
    %c0_15 = arith.constant 0 : index
    %c0_16 = arith.constant 0 : index
    %14 = vector.load %arg7[%c0_15, %c0_16] : memref<1x128xf32, #tpu.memory_space<vmem>>, vector<1x128xf32>
    %cst = arith.constant 4.000000e-03 : f32
    %cst_17 = arith.constant 0.00266666664 : f32
    %cst_18 = arith.constant 1.33333337 : f32
    %cst_19 = arith.constant -0.333333343 : f32
    %c0_i32_20 = arith.constant 0 : i32
    %c16_i32 = arith.constant 16 : i32
    %15 = arith.muli %arg0, %c16_i32 : i32
    %16 = arith.addi %15, %c0_i32_20 : i32
    %17 = arith.index_cast %16 : i32 to index
    %18 = memref.load %arg1[%17] : memref<48xf32, #tpu.memory_space<smem>>
    %19 = vector.broadcast %18 : f32 to vector<1x128xf32>
    %20 = arith.mulf %19, %8 : vector<1x128xf32>
    %21 = vector.broadcast %cst : f32 to vector<1x128xf32>
    %22 = arith.mulf %21, %12 : vector<1x128xf32>
    %23 = arith.addf %11, %22 : vector<1x128xf32>
    %c1_i32 = arith.constant 1 : i32
    %24 = tpu.dynamic_rotate %23 by %c1_i32 dim 1 : vector<1x128xf32>, i32 -> vector<1x128xf32>
    %25 = arith.mulf %24, %4 : vector<1x128xf32>
    %26 = arith.mulf %23, %5 : vector<1x128xf32>
    %27 = arith.addf %25, %26 : vector<1x128xf32>
    %c127_i32 = arith.constant 127 : i32
    %28 = tpu.dynamic_rotate %23 by %c127_i32 dim 1 : vector<1x128xf32>, i32 -> vector<1x128xf32>
    %29 = arith.mulf %28, %6 : vector<1x128xf32>
    %30 = arith.addf %27, %29 : vector<1x128xf32>
    %c2_i32 = arith.constant 2 : i32
    %31 = tpu.dynamic_rotate %23 by %c2_i32 dim 1 : vector<1x128xf32>, i32 -> vector<1x128xf32>
    %32 = arith.mulf %31, %3 : vector<1x128xf32>
    %c126_i32 = arith.constant 126 : i32
    %33 = tpu.dynamic_rotate %23 by %c126_i32 dim 1 : vector<1x128xf32>, i32 -> vector<1x128xf32>
    %34 = arith.mulf %33, %7 : vector<1x128xf32>
    %35 = arith.addf %32, %34 : vector<1x128xf32>
    %36 = arith.addf %30, %35 : vector<1x128xf32>
    %37 = arith.addf %20, %36 : vector<1x128xf32>
    %38 = vector.broadcast %cst_17 : f32 to vector<1x128xf32>
    %39 = arith.mulf %38, %37 : vector<1x128xf32>
    %40 = vector.broadcast %cst_18 : f32 to vector<1x128xf32>
    %41 = arith.mulf %40, %12 : vector<1x128xf32>
    %42 = arith.addf %39, %41 : vector<1x128xf32>
    %43 = vector.broadcast %cst_19 : f32 to vector<1x128xf32>
    %44 = arith.mulf %43, %14 : vector<1x128xf32>
    %45 = arith.addf %42, %44 : vector<1x128xf32>
    %46 = arith.mulf %9, %45 : vector<1x128xf32>
    %47 = arith.mulf %10, %36 : vector<1x128xf32>
    %48 = arith.addf %46, %47 : vector<1x128xf32>
    %49 = vector.broadcast %cst_17 : f32 to vector<1x128xf32>
    %50 = arith.mulf %49, %48 : vector<1x128xf32>
    %51 = vector.broadcast %cst_18 : f32 to vector<1x128xf32>
    %52 = arith.mulf %51, %11 : vector<1x128xf32>
    %53 = arith.addf %50, %52 : vector<1x128xf32>
    %54 = vector.broadcast %cst_19 : f32 to vector<1x128xf32>
    %55 = arith.mulf %54, %13 : vector<1x128xf32>
    %56 = arith.addf %53, %55 : vector<1x128xf32>
    %57 = arith.index_cast %c0_i32_20 : i32 to index
    %c0_21 = arith.constant 0 : index
    %58 = vector.load %arg3[%57, %c0_21] : memref<16x128xf32, #tpu.memory_space<vmem>>, vector<1x128xf32>
    tpu.vector_store %arg3[%57, %c0_21], %56 {strides = array<i32>} : memref<16x128xf32, #tpu.memory_space<vmem>>, vector<1x128xf32>,
    %c1_i32_22 = arith.constant 1 : i32
    %c16_i32_23 = arith.constant 16 : i32
    %59 = arith.muli %arg0, %c16_i32_23 : i32
    %60 = arith.addi %59, %c1_i32_22 : i32
    %61 = arith.index_cast %60 : i32 to index
    %62 = memref.load %arg1[%61] : memref<48xf32, #tpu.memory_space<smem>>
    %63 = vector.broadcast %62 : f32 to vector<1x128xf32>
    %64 = arith.mulf %63, %8 : vector<1x128xf32>
    %65 = vector.broadcast %cst : f32 to vector<1x128xf32>
    %66 = arith.mulf %65, %48 : vector<1x128xf32>
    %67 = arith.addf %56, %66 : vector<1x128xf32>
    %c1_i32_24 = arith.constant 1 : i32
    %68 = tpu.dynamic_rotate %67 by %c1_i32_24 dim 1 : vector<1x128xf32>, i32 -> vector<1x128xf32>
    %69 = arith.mulf %68, %4 : vector<1x128xf32>
    %70 = arith.mulf %67, %5 : vector<1x128xf32>
    %71 = arith.addf %69, %70 : vector<1x128xf32>
    %c127_i32_25 = arith.constant 127 : i32
    %72 = tpu.dynamic_rotate %67 by %c127_i32_25 dim 1 : vector<1x128xf32>, i32 -> vector<1x128xf32>
    %73 = arith.mulf %72, %6 : vector<1x128xf32>
    %74 = arith.addf %71, %73 : vector<1x128xf32>
    %c2_i32_26 = arith.constant 2 : i32
    %75 = tpu.dynamic_rotate %67 by %c2_i32_26 dim 1 : vector<1x128xf32>, i32 -> vector<1x128xf32>
    %76 = arith.mulf %75, %3 : vector<1x128xf32>
    %c126_i32_27 = arith.constant 126 : i32
    %77 = tpu.dynamic_rotate %67 by %c126_i32_27 dim 1 : vector<1x128xf32>, i32 -> vector<1x128xf32>
    %78 = arith.mulf %77, %7 : vector<1x128xf32>
    %79 = arith.addf %76, %78 : vector<1x128xf32>
    %80 = arith.addf %74, %79 : vector<1x128xf32>
    %81 = arith.addf %64, %80 : vector<1x128xf32>
    %82 = vector.broadcast %cst_17 : f32 to vector<1x128xf32>
    %83 = arith.mulf %82, %81 : vector<1x128xf32>
    %84 = vector.broadcast %cst_18 : f32 to vector<1x128xf32>
    %85 = arith.mulf %84, %48 : vector<1x128xf32>
    %86 = arith.addf %83, %85 : vector<1x128xf32>
    %87 = vector.broadcast %cst_19 : f32 to vector<1x128xf32>
    %88 = arith.mulf %87, %12 : vector<1x128xf32>
    %89 = arith.addf %86, %88 : vector<1x128xf32>
    %90 = arith.mulf %9, %89 : vector<1x128xf32>
    %91 = arith.mulf %10, %80 : vector<1x128xf32>
    %92 = arith.addf %90, %91 : vector<1x128xf32>
    %93 = vector.broadcast %cst_17 : f32 to vector<1x128xf32>
    %94 = arith.mulf %93, %92 : vector<1x128xf32>
    %95 = vector.broadcast %cst_18 : f32 to vector<1x128xf32>
    %96 = arith.mulf %95, %56 : vector<1x128xf32>
    %97 = arith.addf %94, %96 : vector<1x128xf32>
    %98 = vector.broadcast %cst_19 : f32 to vector<1x128xf32>
    %99 = arith.mulf %98, %11 : vector<1x128xf32>
    %100 = arith.addf %97, %99 : vector<1x128xf32>
    %101 = arith.index_cast %c1_i32_22 : i32 to index
    %c0_28 = arith.constant 0 : index
    %102 = vector.load %arg3[%101, %c0_28] : memref<16x128xf32, #tpu.memory_space<vmem>>, vector<1x128xf32>
    tpu.vector_store %arg3[%101, %c0_28], %100 {strides = array<i32>} : memref<16x128xf32, #tpu.memory_space<vmem>>, vector<1x128xf32>,
    %c2_i32_29 = arith.constant 2 : i32
    %c16_i32_30 = arith.constant 16 : i32
    %103 = arith.muli %arg0, %c16_i32_30 : i32
    %104 = arith.addi %103, %c2_i32_29 : i32
    %105 = arith.index_cast %104 : i32 to index
    %106 = memref.load %arg1[%105] : memref<48xf32, #tpu.memory_space<smem>>
    %107 = vector.broadcast %106 : f32 to vector<1x128xf32>
    %108 = arith.mulf %107, %8 : vector<1x128xf32>
    %109 = vector.broadcast %cst : f32 to vector<1x128xf32>
    %110 = arith.mulf %109, %92 : vector<1x128xf32>
    %111 = arith.addf %100, %110 : vector<1x128xf32>
    %c1_i32_31 = arith.constant 1 : i32
    %112 = tpu.dynamic_rotate %111 by %c1_i32_31 dim 1 : vector<1x128xf32>, i32 -> vector<1x128xf32>
    %113 = arith.mulf %112, %4 : vector<1x128xf32>
    %114 = arith.mulf %111, %5 : vector<1x128xf32>
    %115 = arith.addf %113, %114 : vector<1x128xf32>
    %c127_i32_32 = arith.constant 127 : i32
    %116 = tpu.dynamic_rotate %111 by %c127_i32_32 dim 1 : vector<1x128xf32>, i32 -> vector<1x128xf32>
    %117 = arith.mulf %116, %6 : vector<1x128xf32>
    %118 = arith.addf %115, %117 : vector<1x128xf32>
    %c2_i32_33 = arith.constant 2 : i32
    %119 = tpu.dynamic_rotate %111 by %c2_i32_33 dim 1 : vector<1x128xf32>, i32 -> vector<1x128xf32>
    %120 = arith.mulf %119, %3 : vector<1x128xf32>
    %c126_i32_34 = arith.constant 126 : i32
    %121 = tpu.dynamic_rotate %111 by %c126_i32_34 dim 1 : vector<1x128xf32>, i32 -> vector<1x128xf32>
    %122 = arith.mulf %121, %7 : vector<1x128xf32>
    %123 = arith.addf %120, %122 : vector<1x128xf32>
    %124 = arith.addf %118, %123 : vector<1x128xf32>
    %125 = arith.addf %108, %124 : vector<1x128xf32>
    %126 = vector.broadcast %cst_17 : f32 to vector<1x128xf32>
    %127 = arith.mulf %126, %125 : vector<1x128xf32>
    %128 = vector.broadcast %cst_18 : f32 to vector<1x128xf32>
    %129 = arith.mulf %128, %92 : vector<1x128xf32>
    %130 = arith.addf %127, %129 : vector<1x128xf32>
    %131 = vector.broadcast %cst_19 : f32 to vector<1x128xf32>
    %132 = arith.mulf %131, %48 : vector<1x128xf32>
    %133 = arith.addf %130, %132 : vector<1x128xf32>
    %134 = arith.mulf %9, %133 : vector<1x128xf32>
    %135 = arith.mulf %10, %124 : vector<1x128xf32>
    %136 = arith.addf %134, %135 : vector<1x128xf32>
    %137 = vector.broadcast %cst_17 : f32 to vector<1x128xf32>
    %138 = arith.mulf %137, %136 : vector<1x128xf32>
    %139 = vector.broadcast %cst_18 : f32 to vector<1x128xf32>
    %140 = arith.mulf %139, %100 : vector<1x128xf32>
    %141 = arith.addf %138, %140 : vector<1x128xf32>
    %142 = vector.broadcast %cst_19 : f32 to vector<1x128xf32>
    %143 = arith.mulf %142, %56 : vector<1x128xf32>
    %144 = arith.addf %141, %143 : vector<1x128xf32>
    %145 = arith.index_cast %c2_i32_29 : i32 to index
    %c0_35 = arith.constant 0 : index
    %146 = vector.load %arg3[%145, %c0_35] : memref<16x128xf32, #tpu.memory_space<vmem>>, vector<1x128xf32>
    tpu.vector_store %arg3[%145, %c0_35], %144 {strides = array<i32>} : memref<16x128xf32, #tpu.memory_space<vmem>>, vector<1x128xf32>,
    %c3_i32 = arith.constant 3 : i32
    %c16_i32_36 = arith.constant 16 : i32
    %147 = arith.muli %arg0, %c16_i32_36 : i32
    %148 = arith.addi %147, %c3_i32 : i32
    %149 = arith.index_cast %148 : i32 to index
    %150 = memref.load %arg1[%149] : memref<48xf32, #tpu.memory_space<smem>>
    %151 = vector.broadcast %150 : f32 to vector<1x128xf32>
    %152 = arith.mulf %151, %8 : vector<1x128xf32>
    %153 = vector.broadcast %cst : f32 to vector<1x128xf32>
    %154 = arith.mulf %153, %136 : vector<1x128xf32>
    %155 = arith.addf %144, %154 : vector<1x128xf32>
    %c1_i32_37 = arith.constant 1 : i32
    %156 = tpu.dynamic_rotate %155 by %c1_i32_37 dim 1 : vector<1x128xf32>, i32 -> vector<1x128xf32>
    %157 = arith.mulf %156, %4 : vector<1x128xf32>
    %158 = arith.mulf %155, %5 : vector<1x128xf32>
    %159 = arith.addf %157, %158 : vector<1x128xf32>
    %c127_i32_38 = arith.constant 127 : i32
    %160 = tpu.dynamic_rotate %155 by %c127_i32_38 dim 1 : vector<1x128xf32>, i32 -> vector<1x128xf32>
    %161 = arith.mulf %160, %6 : vector<1x128xf32>
    %162 = arith.addf %159, %161 : vector<1x128xf32>
    %c2_i32_39 = arith.constant 2 : i32
    %163 = tpu.dynamic_rotate %155 by %c2_i32_39 dim 1 : vector<1x128xf32>, i32 -> vector<1x128xf32>
    %164 = arith.mulf %163, %3 : vector<1x128xf32>
    %c126_i32_40 = arith.constant 126 : i32
    %165 = tpu.dynamic_rotate %155 by %c126_i32_40 dim 1 : vector<1x128xf32>, i32 -> vector<1x128xf32>
    %166 = arith.mulf %165, %7 : vector<1x128xf32>
    %167 = arith.addf %164, %166 : vector<1x128xf32>
    %168 = arith.addf %162, %167 : vector<1x128xf32>
    %169 = arith.addf %152, %168 : vector<1x128xf32>
    %170 = vector.broadcast %cst_17 : f32 to vector<1x128xf32>
    %171 = arith.mulf %170, %169 : vector<1x128xf32>
    %172 = vector.broadcast %cst_18 : f32 to vector<1x128xf32>
    %173 = arith.mulf %172, %136 : vector<1x128xf32>
    %174 = arith.addf %171, %173 : vector<1x128xf32>
    %175 = vector.broadcast %cst_19 : f32 to vector<1x128xf32>
    %176 = arith.mulf %175, %92 : vector<1x128xf32>
    %177 = arith.addf %174, %176 : vector<1x128xf32>
    %178 = arith.mulf %9, %177 : vector<1x128xf32>
    %179 = arith.mulf %10, %168 : vector<1x128xf32>
    %180 = arith.addf %178, %179 : vector<1x128xf32>
    %181 = vector.broadcast %cst_17 : f32 to vector<1x128xf32>
    %182 = arith.mulf %181, %180 : vector<1x128xf32>
    %183 = vector.broadcast %cst_18 : f32 to vector<1x128xf32>
    %184 = arith.mulf %183, %144 : vector<1x128xf32>
    %185 = arith.addf %182, %184 : vector<1x128xf32>
    %186 = vector.broadcast %cst_19 : f32 to vector<1x128xf32>
    %187 = arith.mulf %186, %100 : vector<1x128xf32>
    %188 = arith.addf %185, %187 : vector<1x128xf32>
    %189 = arith.index_cast %c3_i32 : i32 to index
    %c0_41 = arith.constant 0 : index
    %190 = vector.load %arg3[%189, %c0_41] : memref<16x128xf32, #tpu.memory_space<vmem>>, vector<1x128xf32>
    tpu.vector_store %arg3[%189, %c0_41], %188 {strides = array<i32>} : memref<16x128xf32, #tpu.memory_space<vmem>>, vector<1x128xf32>,
    %c4_i32 = arith.constant 4 : i32
    %c16_i32_42 = arith.constant 16 : i32
    %191 = arith.muli %arg0, %c16_i32_42 : i32
    %192 = arith.addi %191, %c4_i32 : i32
    %193 = arith.index_cast %192 : i32 to index
    %194 = memref.load %arg1[%193] : memref<48xf32, #tpu.memory_space<smem>>
    %195 = vector.broadcast %194 : f32 to vector<1x128xf32>
    %196 = arith.mulf %195, %8 : vector<1x128xf32>
    %197 = vector.broadcast %cst : f32 to vector<1x128xf32>
    %198 = arith.mulf %197, %180 : vector<1x128xf32>
    %199 = arith.addf %188, %198 : vector<1x128xf32>
    %c1_i32_43 = arith.constant 1 : i32
    %200 = tpu.dynamic_rotate %199 by %c1_i32_43 dim 1 : vector<1x128xf32>, i32 -> vector<1x128xf32>
    %201 = arith.mulf %200, %4 : vector<1x128xf32>
    %202 = arith.mulf %199, %5 : vector<1x128xf32>
    %203 = arith.addf %201, %202 : vector<1x128xf32>
    %c127_i32_44 = arith.constant 127 : i32
    %204 = tpu.dynamic_rotate %199 by %c127_i32_44 dim 1 : vector<1x128xf32>, i32 -> vector<1x128xf32>
    %205 = arith.mulf %204, %6 : vector<1x128xf32>
    %206 = arith.addf %203, %205 : vector<1x128xf32>
    %c2_i32_45 = arith.constant 2 : i32
    %207 = tpu.dynamic_rotate %199 by %c2_i32_45 dim 1 : vector<1x128xf32>, i32 -> vector<1x128xf32>
    %208 = arith.mulf %207, %3 : vector<1x128xf32>
    %c126_i32_46 = arith.constant 126 : i32
    %209 = tpu.dynamic_rotate %199 by %c126_i32_46 dim 1 : vector<1x128xf32>, i32 -> vector<1x128xf32>
    %210 = arith.mulf %209, %7 : vector<1x128xf32>
    %211 = arith.addf %208, %210 : vector<1x128xf32>
    %212 = arith.addf %206, %211 : vector<1x128xf32>
    %213 = arith.addf %196, %212 : vector<1x128xf32>
    %214 = vector.broadcast %cst_17 : f32 to vector<1x128xf32>
    %215 = arith.mulf %214, %213 : vector<1x128xf32>
    %216 = vector.broadcast %cst_18 : f32 to vector<1x128xf32>
    %217 = arith.mulf %216, %180 : vector<1x128xf32>
    %218 = arith.addf %215, %217 : vector<1x128xf32>
    %219 = vector.broadcast %cst_19 : f32 to vector<1x128xf32>
    %220 = arith.mulf %219, %136 : vector<1x128xf32>
    %221 = arith.addf %218, %220 : vector<1x128xf32>
    %222 = arith.mulf %9, %221 : vector<1x128xf32>
    %223 = arith.mulf %10, %212 : vector<1x128xf32>
    %224 = arith.addf %222, %223 : vector<1x128xf32>
    %225 = vector.broadcast %cst_17 : f32 to vector<1x128xf32>
    %226 = arith.mulf %225, %224 : vector<1x128xf32>
    %227 = vector.broadcast %cst_18 : f32 to vector<1x128xf32>
    %228 = arith.mulf %227, %188 : vector<1x128xf32>
    %229 = arith.addf %226, %228 : vector<1x128xf32>
    %230 = vector.broadcast %cst_19 : f32 to vector<1x128xf32>
    %231 = arith.mulf %230, %144 : vector<1x128xf32>
    %232 = arith.addf %229, %231 : vector<1x128xf32>
    %233 = arith.index_cast %c4_i32 : i32 to index
    %c0_47 = arith.constant 0 : index
    %234 = vector.load %arg3[%233, %c0_47] : memref<16x128xf32, #tpu.memory_space<vmem>>, vector<1x128xf32>
    tpu.vector_store %arg3[%233, %c0_47], %232 {strides = array<i32>} : memref<16x128xf32, #tpu.memory_space<vmem>>, vector<1x128xf32>,
    %c5_i32 = arith.constant 5 : i32
    %c16_i32_48 = arith.constant 16 : i32
    %235 = arith.muli %arg0, %c16_i32_48 : i32
    %236 = arith.addi %235, %c5_i32 : i32
    %237 = arith.index_cast %236 : i32 to index
    %238 = memref.load %arg1[%237] : memref<48xf32, #tpu.memory_space<smem>>
    %239 = vector.broadcast %238 : f32 to vector<1x128xf32>
    %240 = arith.mulf %239, %8 : vector<1x128xf32>
    %241 = vector.broadcast %cst : f32 to vector<1x128xf32>
    %242 = arith.mulf %241, %224 : vector<1x128xf32>
    %243 = arith.addf %232, %242 : vector<1x128xf32>
    %c1_i32_49 = arith.constant 1 : i32
    %244 = tpu.dynamic_rotate %243 by %c1_i32_49 dim 1 : vector<1x128xf32>, i32 -> vector<1x128xf32>
    %245 = arith.mulf %244, %4 : vector<1x128xf32>
    %246 = arith.mulf %243, %5 : vector<1x128xf32>
    %247 = arith.addf %245, %246 : vector<1x128xf32>
    %c127_i32_50 = arith.constant 127 : i32
    %248 = tpu.dynamic_rotate %243 by %c127_i32_50 dim 1 : vector<1x128xf32>, i32 -> vector<1x128xf32>
    %249 = arith.mulf %248, %6 : vector<1x128xf32>
    %250 = arith.addf %247, %249 : vector<1x128xf32>
    %c2_i32_51 = arith.constant 2 : i32
    %251 = tpu.dynamic_rotate %243 by %c2_i32_51 dim 1 : vector<1x128xf32>, i32 -> vector<1x128xf32>
    %252 = arith.mulf %251, %3 : vector<1x128xf32>
    %c126_i32_52 = arith.constant 126 : i32
    %253 = tpu.dynamic_rotate %243 by %c126_i32_52 dim 1 : vector<1x128xf32>, i32 -> vector<1x128xf32>
    %254 = arith.mulf %253, %7 : vector<1x128xf32>
    %255 = arith.addf %252, %254 : vector<1x128xf32>
    %256 = arith.addf %250, %255 : vector<1x128xf32>
    %257 = arith.addf %240, %256 : vector<1x128xf32>
    %258 = vector.broadcast %cst_17 : f32 to vector<1x128xf32>
    %259 = arith.mulf %258, %257 : vector<1x128xf32>
    %260 = vector.broadcast %cst_18 : f32 to vector<1x128xf32>
    %261 = arith.mulf %260, %224 : vector<1x128xf32>
    %262 = arith.addf %259, %261 : vector<1x128xf32>
    %263 = vector.broadcast %cst_19 : f32 to vector<1x128xf32>
    %264 = arith.mulf %263, %180 : vector<1x128xf32>
    %265 = arith.addf %262, %264 : vector<1x128xf32>
    %266 = arith.mulf %9, %265 : vector<1x128xf32>
    %267 = arith.mulf %10, %256 : vector<1x128xf32>
    %268 = arith.addf %266, %267 : vector<1x128xf32>
    %269 = vector.broadcast %cst_17 : f32 to vector<1x128xf32>
    %270 = arith.mulf %269, %268 : vector<1x128xf32>
    %271 = vector.broadcast %cst_18 : f32 to vector<1x128xf32>
    %272 = arith.mulf %271, %232 : vector<1x128xf32>
    %273 = arith.addf %270, %272 : vector<1x128xf32>
    %274 = vector.broadcast %cst_19 : f32 to vector<1x128xf32>
    %275 = arith.mulf %274, %188 : vector<1x128xf32>
    %276 = arith.addf %273, %275 : vector<1x128xf32>
    %277 = arith.index_cast %c5_i32 : i32 to index
    %c0_53 = arith.constant 0 : index
    %278 = vector.load %arg3[%277, %c0_53] : memref<16x128xf32, #tpu.memory_space<vmem>>, vector<1x128xf32>
    tpu.vector_store %arg3[%277, %c0_53], %276 {strides = array<i32>} : memref<16x128xf32, #tpu.memory_space<vmem>>, vector<1x128xf32>,
    %c6_i32 = arith.constant 6 : i32
    %c16_i32_54 = arith.constant 16 : i32
    %279 = arith.muli %arg0, %c16_i32_54 : i32
    %280 = arith.addi %279, %c6_i32 : i32
    %281 = arith.index_cast %280 : i32 to index
    %282 = memref.load %arg1[%281] : memref<48xf32, #tpu.memory_space<smem>>
    %283 = vector.broadcast %282 : f32 to vector<1x128xf32>
    %284 = arith.mulf %283, %8 : vector<1x128xf32>
    %285 = vector.broadcast %cst : f32 to vector<1x128xf32>
    %286 = arith.mulf %285, %268 : vector<1x128xf32>
    %287 = arith.addf %276, %286 : vector<1x128xf32>
    %c1_i32_55 = arith.constant 1 : i32
    %288 = tpu.dynamic_rotate %287 by %c1_i32_55 dim 1 : vector<1x128xf32>, i32 -> vector<1x128xf32>
    %289 = arith.mulf %288, %4 : vector<1x128xf32>
    %290 = arith.mulf %287, %5 : vector<1x128xf32>
    %291 = arith.addf %289, %290 : vector<1x128xf32>
    %c127_i32_56 = arith.constant 127 : i32
    %292 = tpu.dynamic_rotate %287 by %c127_i32_56 dim 1 : vector<1x128xf32>, i32 -> vector<1x128xf32>
    %293 = arith.mulf %292, %6 : vector<1x128xf32>
    %294 = arith.addf %291, %293 : vector<1x128xf32>
    %c2_i32_57 = arith.constant 2 : i32
    %295 = tpu.dynamic_rotate %287 by %c2_i32_57 dim 1 : vector<1x128xf32>, i32 -> vector<1x128xf32>
    %296 = arith.mulf %295, %3 : vector<1x128xf32>
    %c126_i32_58 = arith.constant 126 : i32
    %297 = tpu.dynamic_rotate %287 by %c126_i32_58 dim 1 : vector<1x128xf32>, i32 -> vector<1x128xf32>
    %298 = arith.mulf %297, %7 : vector<1x128xf32>
    %299 = arith.addf %296, %298 : vector<1x128xf32>
    %300 = arith.addf %294, %299 : vector<1x128xf32>
    %301 = arith.addf %284, %300 : vector<1x128xf32>
    %302 = vector.broadcast %cst_17 : f32 to vector<1x128xf32>
    %303 = arith.mulf %302, %301 : vector<1x128xf32>
    %304 = vector.broadcast %cst_18 : f32 to vector<1x128xf32>
    %305 = arith.mulf %304, %268 : vector<1x128xf32>
    %306 = arith.addf %303, %305 : vector<1x128xf32>
    %307 = vector.broadcast %cst_19 : f32 to vector<1x128xf32>
    %308 = arith.mulf %307, %224 : vector<1x128xf32>
    %309 = arith.addf %306, %308 : vector<1x128xf32>
    %310 = arith.mulf %9, %309 : vector<1x128xf32>
    %311 = arith.mulf %10, %300 : vector<1x128xf32>
    %312 = arith.addf %310, %311 : vector<1x128xf32>
    %313 = vector.broadcast %cst_17 : f32 to vector<1x128xf32>
    %314 = arith.mulf %313, %312 : vector<1x128xf32>
    %315 = vector.broadcast %cst_18 : f32 to vector<1x128xf32>
    %316 = arith.mulf %315, %276 : vector<1x128xf32>
    %317 = arith.addf %314, %316 : vector<1x128xf32>
    %318 = vector.broadcast %cst_19 : f32 to vector<1x128xf32>
    %319 = arith.mulf %318, %232 : vector<1x128xf32>
    %320 = arith.addf %317, %319 : vector<1x128xf32>
    %321 = arith.index_cast %c6_i32 : i32 to index
    %c0_59 = arith.constant 0 : index
    %322 = vector.load %arg3[%321, %c0_59] : memref<16x128xf32, #tpu.memory_space<vmem>>, vector<1x128xf32>
    tpu.vector_store %arg3[%321, %c0_59], %320 {strides = array<i32>} : memref<16x128xf32, #tpu.memory_space<vmem>>, vector<1x128xf32>,
    %c7_i32 = arith.constant 7 : i32
    %c16_i32_60 = arith.constant 16 : i32
    %323 = arith.muli %arg0, %c16_i32_60 : i32
    %324 = arith.addi %323, %c7_i32 : i32
    %325 = arith.index_cast %324 : i32 to index
    %326 = memref.load %arg1[%325] : memref<48xf32, #tpu.memory_space<smem>>
    %327 = vector.broadcast %326 : f32 to vector<1x128xf32>
    %328 = arith.mulf %327, %8 : vector<1x128xf32>
    %329 = vector.broadcast %cst : f32 to vector<1x128xf32>
    %330 = arith.mulf %329, %312 : vector<1x128xf32>
    %331 = arith.addf %320, %330 : vector<1x128xf32>
    %c1_i32_61 = arith.constant 1 : i32
    %332 = tpu.dynamic_rotate %331 by %c1_i32_61 dim 1 : vector<1x128xf32>, i32 -> vector<1x128xf32>
    %333 = arith.mulf %332, %4 : vector<1x128xf32>
    %334 = arith.mulf %331, %5 : vector<1x128xf32>
    %335 = arith.addf %333, %334 : vector<1x128xf32>
    %c127_i32_62 = arith.constant 127 : i32
    %336 = tpu.dynamic_rotate %331 by %c127_i32_62 dim 1 : vector<1x128xf32>, i32 -> vector<1x128xf32>
    %337 = arith.mulf %336, %6 : vector<1x128xf32>
    %338 = arith.addf %335, %337 : vector<1x128xf32>
    %c2_i32_63 = arith.constant 2 : i32
    %339 = tpu.dynamic_rotate %331 by %c2_i32_63 dim 1 : vector<1x128xf32>, i32 -> vector<1x128xf32>
    %340 = arith.mulf %339, %3 : vector<1x128xf32>
    %c126_i32_64 = arith.constant 126 : i32
    %341 = tpu.dynamic_rotate %331 by %c126_i32_64 dim 1 : vector<1x128xf32>, i32 -> vector<1x128xf32>
    %342 = arith.mulf %341, %7 : vector<1x128xf32>
    %343 = arith.addf %340, %342 : vector<1x128xf32>
    %344 = arith.addf %338, %343 : vector<1x128xf32>
    %345 = arith.addf %328, %344 : vector<1x128xf32>
    %346 = vector.broadcast %cst_17 : f32 to vector<1x128xf32>
    %347 = arith.mulf %346, %345 : vector<1x128xf32>
    %348 = vector.broadcast %cst_18 : f32 to vector<1x128xf32>
    %349 = arith.mulf %348, %312 : vector<1x128xf32>
    %350 = arith.addf %347, %349 : vector<1x128xf32>
    %351 = vector.broadcast %cst_19 : f32 to vector<1x128xf32>
    %352 = arith.mulf %351, %268 : vector<1x128xf32>
    %353 = arith.addf %350, %352 : vector<1x128xf32>
    %354 = arith.mulf %9, %353 : vector<1x128xf32>
    %355 = arith.mulf %10, %344 : vector<1x128xf32>
    %356 = arith.addf %354, %355 : vector<1x128xf32>
    %357 = vector.broadcast %cst_17 : f32 to vector<1x128xf32>
    %358 = arith.mulf %357, %356 : vector<1x128xf32>
    %359 = vector.broadcast %cst_18 : f32 to vector<1x128xf32>
    %360 = arith.mulf %359, %320 : vector<1x128xf32>
    %361 = arith.addf %358, %360 : vector<1x128xf32>
    %362 = vector.broadcast %cst_19 : f32 to vector<1x128xf32>
    %363 = arith.mulf %362, %276 : vector<1x128xf32>
    %364 = arith.addf %361, %363 : vector<1x128xf32>
    %365 = arith.index_cast %c7_i32 : i32 to index
    %c0_65 = arith.constant 0 : index
    %366 = vector.load %arg3[%365, %c0_65] : memref<16x128xf32, #tpu.memory_space<vmem>>, vector<1x128xf32>
    tpu.vector_store %arg3[%365, %c0_65], %364 {strides = array<i32>} : memref<16x128xf32, #tpu.memory_space<vmem>>, vector<1x128xf32>,
    %c8_i32 = arith.constant 8 : i32
    %c16_i32_66 = arith.constant 16 : i32
    %367 = arith.muli %arg0, %c16_i32_66 : i32
    %368 = arith.addi %367, %c8_i32 : i32
    %369 = arith.index_cast %368 : i32 to index
    %370 = memref.load %arg1[%369] : memref<48xf32, #tpu.memory_space<smem>>
    %371 = vector.broadcast %370 : f32 to vector<1x128xf32>
    %372 = arith.mulf %371, %8 : vector<1x128xf32>
    %373 = vector.broadcast %cst : f32 to vector<1x128xf32>
    %374 = arith.mulf %373, %356 : vector<1x128xf32>
    %375 = arith.addf %364, %374 : vector<1x128xf32>
    %c1_i32_67 = arith.constant 1 : i32
    %376 = tpu.dynamic_rotate %375 by %c1_i32_67 dim 1 : vector<1x128xf32>, i32 -> vector<1x128xf32>
    %377 = arith.mulf %376, %4 : vector<1x128xf32>
    %378 = arith.mulf %375, %5 : vector<1x128xf32>
    %379 = arith.addf %377, %378 : vector<1x128xf32>
    %c127_i32_68 = arith.constant 127 : i32
    %380 = tpu.dynamic_rotate %375 by %c127_i32_68 dim 1 : vector<1x128xf32>, i32 -> vector<1x128xf32>
    %381 = arith.mulf %380, %6 : vector<1x128xf32>
    %382 = arith.addf %379, %381 : vector<1x128xf32>
    %c2_i32_69 = arith.constant 2 : i32
    %383 = tpu.dynamic_rotate %375 by %c2_i32_69 dim 1 : vector<1x128xf32>, i32 -> vector<1x128xf32>
    %384 = arith.mulf %383, %3 : vector<1x128xf32>
    %c126_i32_70 = arith.constant 126 : i32
    %385 = tpu.dynamic_rotate %375 by %c126_i32_70 dim 1 : vector<1x128xf32>, i32 -> vector<1x128xf32>
    %386 = arith.mulf %385, %7 : vector<1x128xf32>
    %387 = arith.addf %384, %386 : vector<1x128xf32>
    %388 = arith.addf %382, %387 : vector<1x128xf32>
    %389 = arith.addf %372, %388 : vector<1x128xf32>
    %390 = vector.broadcast %cst_17 : f32 to vector<1x128xf32>
    %391 = arith.mulf %390, %389 : vector<1x128xf32>
    %392 = vector.broadcast %cst_18 : f32 to vector<1x128xf32>
    %393 = arith.mulf %392, %356 : vector<1x128xf32>
    %394 = arith.addf %391, %393 : vector<1x128xf32>
    %395 = vector.broadcast %cst_19 : f32 to vector<1x128xf32>
    %396 = arith.mulf %395, %312 : vector<1x128xf32>
    %397 = arith.addf %394, %396 : vector<1x128xf32>
    %398 = arith.mulf %9, %397 : vector<1x128xf32>
    %399 = arith.mulf %10, %388 : vector<1x128xf32>
    %400 = arith.addf %398, %399 : vector<1x128xf32>
    %401 = vector.broadcast %cst_17 : f32 to vector<1x128xf32>
    %402 = arith.mulf %401, %400 : vector<1x128xf32>
    %403 = vector.broadcast %cst_18 : f32 to vector<1x128xf32>
    %404 = arith.mulf %403, %364 : vector<1x128xf32>
    %405 = arith.addf %402, %404 : vector<1x128xf32>
    %406 = vector.broadcast %cst_19 : f32 to vector<1x128xf32>
    %407 = arith.mulf %406, %320 : vector<1x128xf32>
    %408 = arith.addf %405, %407 : vector<1x128xf32>
    %409 = arith.index_cast %c8_i32 : i32 to index
    %c0_71 = arith.constant 0 : index
    %410 = vector.load %arg3[%409, %c0_71] : memref<16x128xf32, #tpu.memory_space<vmem>>, vector<1x128xf32>
    tpu.vector_store %arg3[%409, %c0_71], %408 {strides = array<i32>} : memref<16x128xf32, #tpu.memory_space<vmem>>, vector<1x128xf32>,
    %c9_i32 = arith.constant 9 : i32
    %c16_i32_72 = arith.constant 16 : i32
    %411 = arith.muli %arg0, %c16_i32_72 : i32
    %412 = arith.addi %411, %c9_i32 : i32
    %413 = arith.index_cast %412 : i32 to index
    %414 = memref.load %arg1[%413] : memref<48xf32, #tpu.memory_space<smem>>
    %415 = vector.broadcast %414 : f32 to vector<1x128xf32>
    %416 = arith.mulf %415, %8 : vector<1x128xf32>
    %417 = vector.broadcast %cst : f32 to vector<1x128xf32>
    %418 = arith.mulf %417, %400 : vector<1x128xf32>
    %419 = arith.addf %408, %418 : vector<1x128xf32>
    %c1_i32_73 = arith.constant 1 : i32
    %420 = tpu.dynamic_rotate %419 by %c1_i32_73 dim 1 : vector<1x128xf32>, i32 -> vector<1x128xf32>
    %421 = arith.mulf %420, %4 : vector<1x128xf32>
    %422 = arith.mulf %419, %5 : vector<1x128xf32>
    %423 = arith.addf %421, %422 : vector<1x128xf32>
    %c127_i32_74 = arith.constant 127 : i32
    %424 = tpu.dynamic_rotate %419 by %c127_i32_74 dim 1 : vector<1x128xf32>, i32 -> vector<1x128xf32>
    %425 = arith.mulf %424, %6 : vector<1x128xf32>
    %426 = arith.addf %423, %425 : vector<1x128xf32>
    %c2_i32_75 = arith.constant 2 : i32
    %427 = tpu.dynamic_rotate %419 by %c2_i32_75 dim 1 : vector<1x128xf32>, i32 -> vector<1x128xf32>
    %428 = arith.mulf %427, %3 : vector<1x128xf32>
    %c126_i32_76 = arith.constant 126 : i32
    %429 = tpu.dynamic_rotate %419 by %c126_i32_76 dim 1 : vector<1x128xf32>, i32 -> vector<1x128xf32>
    %430 = arith.mulf %429, %7 : vector<1x128xf32>
    %431 = arith.addf %428, %430 : vector<1x128xf32>
    %432 = arith.addf %426, %431 : vector<1x128xf32>
    %433 = arith.addf %416, %432 : vector<1x128xf32>
    %434 = vector.broadcast %cst_17 : f32 to vector<1x128xf32>
    %435 = arith.mulf %434, %433 : vector<1x128xf32>
    %436 = vector.broadcast %cst_18 : f32 to vector<1x128xf32>
    %437 = arith.mulf %436, %400 : vector<1x128xf32>
    %438 = arith.addf %435, %437 : vector<1x128xf32>
    %439 = vector.broadcast %cst_19 : f32 to vector<1x128xf32>
    %440 = arith.mulf %439, %356 : vector<1x128xf32>
    %441 = arith.addf %438, %440 : vector<1x128xf32>
    %442 = arith.mulf %9, %441 : vector<1x128xf32>
    %443 = arith.mulf %10, %432 : vector<1x128xf32>
    %444 = arith.addf %442, %443 : vector<1x128xf32>
    %445 = vector.broadcast %cst_17 : f32 to vector<1x128xf32>
    %446 = arith.mulf %445, %444 : vector<1x128xf32>
    %447 = vector.broadcast %cst_18 : f32 to vector<1x128xf32>
    %448 = arith.mulf %447, %408 : vector<1x128xf32>
    %449 = arith.addf %446, %448 : vector<1x128xf32>
    %450 = vector.broadcast %cst_19 : f32 to vector<1x128xf32>
    %451 = arith.mulf %450, %364 : vector<1x128xf32>
    %452 = arith.addf %449, %451 : vector<1x128xf32>
    %453 = arith.index_cast %c9_i32 : i32 to index
    %c0_77 = arith.constant 0 : index
    %454 = vector.load %arg3[%453, %c0_77] : memref<16x128xf32, #tpu.memory_space<vmem>>, vector<1x128xf32>
    tpu.vector_store %arg3[%453, %c0_77], %452 {strides = array<i32>} : memref<16x128xf32, #tpu.memory_space<vmem>>, vector<1x128xf32>,
    %c10_i32 = arith.constant 10 : i32
    %c16_i32_78 = arith.constant 16 : i32
    %455 = arith.muli %arg0, %c16_i32_78 : i32
    %456 = arith.addi %455, %c10_i32 : i32
    %457 = arith.index_cast %456 : i32 to index
    %458 = memref.load %arg1[%457] : memref<48xf32, #tpu.memory_space<smem>>
    %459 = vector.broadcast %458 : f32 to vector<1x128xf32>
    %460 = arith.mulf %459, %8 : vector<1x128xf32>
    %461 = vector.broadcast %cst : f32 to vector<1x128xf32>
    %462 = arith.mulf %461, %444 : vector<1x128xf32>
    %463 = arith.addf %452, %462 : vector<1x128xf32>
    %c1_i32_79 = arith.constant 1 : i32
    %464 = tpu.dynamic_rotate %463 by %c1_i32_79 dim 1 : vector<1x128xf32>, i32 -> vector<1x128xf32>
    %465 = arith.mulf %464, %4 : vector<1x128xf32>
    %466 = arith.mulf %463, %5 : vector<1x128xf32>
    %467 = arith.addf %465, %466 : vector<1x128xf32>
    %c127_i32_80 = arith.constant 127 : i32
    %468 = tpu.dynamic_rotate %463 by %c127_i32_80 dim 1 : vector<1x128xf32>, i32 -> vector<1x128xf32>
    %469 = arith.mulf %468, %6 : vector<1x128xf32>
    %470 = arith.addf %467, %469 : vector<1x128xf32>
    %c2_i32_81 = arith.constant 2 : i32
    %471 = tpu.dynamic_rotate %463 by %c2_i32_81 dim 1 : vector<1x128xf32>, i32 -> vector<1x128xf32>
    %472 = arith.mulf %471, %3 : vector<1x128xf32>
    %c126_i32_82 = arith.constant 126 : i32
    %473 = tpu.dynamic_rotate %463 by %c126_i32_82 dim 1 : vector<1x128xf32>, i32 -> vector<1x128xf32>
    %474 = arith.mulf %473, %7 : vector<1x128xf32>
    %475 = arith.addf %472, %474 : vector<1x128xf32>
    %476 = arith.addf %470, %475 : vector<1x128xf32>
    %477 = arith.addf %460, %476 : vector<1x128xf32>
    %478 = vector.broadcast %cst_17 : f32 to vector<1x128xf32>
    %479 = arith.mulf %478, %477 : vector<1x128xf32>
    %480 = vector.broadcast %cst_18 : f32 to vector<1x128xf32>
    %481 = arith.mulf %480, %444 : vector<1x128xf32>
    %482 = arith.addf %479, %481 : vector<1x128xf32>
    %483 = vector.broadcast %cst_19 : f32 to vector<1x128xf32>
    %484 = arith.mulf %483, %400 : vector<1x128xf32>
    %485 = arith.addf %482, %484 : vector<1x128xf32>
    %486 = arith.mulf %9, %485 : vector<1x128xf32>
    %487 = arith.mulf %10, %476 : vector<1x128xf32>
    %488 = arith.addf %486, %487 : vector<1x128xf32>
    %489 = vector.broadcast %cst_17 : f32 to vector<1x128xf32>
    %490 = arith.mulf %489, %488 : vector<1x128xf32>
    %491 = vector.broadcast %cst_18 : f32 to vector<1x128xf32>
    %492 = arith.mulf %491, %452 : vector<1x128xf32>
    %493 = arith.addf %490, %492 : vector<1x128xf32>
    %494 = vector.broadcast %cst_19 : f32 to vector<1x128xf32>
    %495 = arith.mulf %494, %408 : vector<1x128xf32>
    %496 = arith.addf %493, %495 : vector<1x128xf32>
    %497 = arith.index_cast %c10_i32 : i32 to index
    %c0_83 = arith.constant 0 : index
    %498 = vector.load %arg3[%497, %c0_83] : memref<16x128xf32, #tpu.memory_space<vmem>>, vector<1x128xf32>
    tpu.vector_store %arg3[%497, %c0_83], %496 {strides = array<i32>} : memref<16x128xf32, #tpu.memory_space<vmem>>, vector<1x128xf32>,
    %c11_i32 = arith.constant 11 : i32
    %c16_i32_84 = arith.constant 16 : i32
    %499 = arith.muli %arg0, %c16_i32_84 : i32
    %500 = arith.addi %499, %c11_i32 : i32
    %501 = arith.index_cast %500 : i32 to index
    %502 = memref.load %arg1[%501] : memref<48xf32, #tpu.memory_space<smem>>
    %503 = vector.broadcast %502 : f32 to vector<1x128xf32>
    %504 = arith.mulf %503, %8 : vector<1x128xf32>
    %505 = vector.broadcast %cst : f32 to vector<1x128xf32>
    %506 = arith.mulf %505, %488 : vector<1x128xf32>
    %507 = arith.addf %496, %506 : vector<1x128xf32>
    %c1_i32_85 = arith.constant 1 : i32
    %508 = tpu.dynamic_rotate %507 by %c1_i32_85 dim 1 : vector<1x128xf32>, i32 -> vector<1x128xf32>
    %509 = arith.mulf %508, %4 : vector<1x128xf32>
    %510 = arith.mulf %507, %5 : vector<1x128xf32>
    %511 = arith.addf %509, %510 : vector<1x128xf32>
    %c127_i32_86 = arith.constant 127 : i32
    %512 = tpu.dynamic_rotate %507 by %c127_i32_86 dim 1 : vector<1x128xf32>, i32 -> vector<1x128xf32>
    %513 = arith.mulf %512, %6 : vector<1x128xf32>
    %514 = arith.addf %511, %513 : vector<1x128xf32>
    %c2_i32_87 = arith.constant 2 : i32
    %515 = tpu.dynamic_rotate %507 by %c2_i32_87 dim 1 : vector<1x128xf32>, i32 -> vector<1x128xf32>
    %516 = arith.mulf %515, %3 : vector<1x128xf32>
    %c126_i32_88 = arith.constant 126 : i32
    %517 = tpu.dynamic_rotate %507 by %c126_i32_88 dim 1 : vector<1x128xf32>, i32 -> vector<1x128xf32>
    %518 = arith.mulf %517, %7 : vector<1x128xf32>
    %519 = arith.addf %516, %518 : vector<1x128xf32>
    %520 = arith.addf %514, %519 : vector<1x128xf32>
    %521 = arith.addf %504, %520 : vector<1x128xf32>
    %522 = vector.broadcast %cst_17 : f32 to vector<1x128xf32>
    %523 = arith.mulf %522, %521 : vector<1x128xf32>
    %524 = vector.broadcast %cst_18 : f32 to vector<1x128xf32>
    %525 = arith.mulf %524, %488 : vector<1x128xf32>
    %526 = arith.addf %523, %525 : vector<1x128xf32>
    %527 = vector.broadcast %cst_19 : f32 to vector<1x128xf32>
    %528 = arith.mulf %527, %444 : vector<1x128xf32>
    %529 = arith.addf %526, %528 : vector<1x128xf32>
    %530 = arith.mulf %9, %529 : vector<1x128xf32>
    %531 = arith.mulf %10, %520 : vector<1x128xf32>
    %532 = arith.addf %530, %531 : vector<1x128xf32>
    %533 = vector.broadcast %cst_17 : f32 to vector<1x128xf32>
    %534 = arith.mulf %533, %532 : vector<1x128xf32>
    %535 = vector.broadcast %cst_18 : f32 to vector<1x128xf32>
    %536 = arith.mulf %535, %496 : vector<1x128xf32>
    %537 = arith.addf %534, %536 : vector<1x128xf32>
    %538 = vector.broadcast %cst_19 : f32 to vector<1x128xf32>
    %539 = arith.mulf %538, %452 : vector<1x128xf32>
    %540 = arith.addf %537, %539 : vector<1x128xf32>
    %541 = arith.index_cast %c11_i32 : i32 to index
    %c0_89 = arith.constant 0 : index
    %542 = vector.load %arg3[%541, %c0_89] : memref<16x128xf32, #tpu.memory_space<vmem>>, vector<1x128xf32>
    tpu.vector_store %arg3[%541, %c0_89], %540 {strides = array<i32>} : memref<16x128xf32, #tpu.memory_space<vmem>>, vector<1x128xf32>,
    %c12_i32 = arith.constant 12 : i32
    %c16_i32_90 = arith.constant 16 : i32
    %543 = arith.muli %arg0, %c16_i32_90 : i32
    %544 = arith.addi %543, %c12_i32 : i32
    %545 = arith.index_cast %544 : i32 to index
    %546 = memref.load %arg1[%545] : memref<48xf32, #tpu.memory_space<smem>>
    %547 = vector.broadcast %546 : f32 to vector<1x128xf32>
    %548 = arith.mulf %547, %8 : vector<1x128xf32>
    %549 = vector.broadcast %cst : f32 to vector<1x128xf32>
    %550 = arith.mulf %549, %532 : vector<1x128xf32>
    %551 = arith.addf %540, %550 : vector<1x128xf32>
    %c1_i32_91 = arith.constant 1 : i32
    %552 = tpu.dynamic_rotate %551 by %c1_i32_91 dim 1 : vector<1x128xf32>, i32 -> vector<1x128xf32>
    %553 = arith.mulf %552, %4 : vector<1x128xf32>
    %554 = arith.mulf %551, %5 : vector<1x128xf32>
    %555 = arith.addf %553, %554 : vector<1x128xf32>
    %c127_i32_92 = arith.constant 127 : i32
    %556 = tpu.dynamic_rotate %551 by %c127_i32_92 dim 1 : vector<1x128xf32>, i32 -> vector<1x128xf32>
    %557 = arith.mulf %556, %6 : vector<1x128xf32>
    %558 = arith.addf %555, %557 : vector<1x128xf32>
    %c2_i32_93 = arith.constant 2 : i32
    %559 = tpu.dynamic_rotate %551 by %c2_i32_93 dim 1 : vector<1x128xf32>, i32 -> vector<1x128xf32>
    %560 = arith.mulf %559, %3 : vector<1x128xf32>
    %c126_i32_94 = arith.constant 126 : i32
    %561 = tpu.dynamic_rotate %551 by %c126_i32_94 dim 1 : vector<1x128xf32>, i32 -> vector<1x128xf32>
    %562 = arith.mulf %561, %7 : vector<1x128xf32>
    %563 = arith.addf %560, %562 : vector<1x128xf32>
    %564 = arith.addf %558, %563 : vector<1x128xf32>
    %565 = arith.addf %548, %564 : vector<1x128xf32>
    %566 = vector.broadcast %cst_17 : f32 to vector<1x128xf32>
    %567 = arith.mulf %566, %565 : vector<1x128xf32>
    %568 = vector.broadcast %cst_18 : f32 to vector<1x128xf32>
    %569 = arith.mulf %568, %532 : vector<1x128xf32>
    %570 = arith.addf %567, %569 : vector<1x128xf32>
    %571 = vector.broadcast %cst_19 : f32 to vector<1x128xf32>
    %572 = arith.mulf %571, %488 : vector<1x128xf32>
    %573 = arith.addf %570, %572 : vector<1x128xf32>
    %574 = arith.mulf %9, %573 : vector<1x128xf32>
    %575 = arith.mulf %10, %564 : vector<1x128xf32>
    %576 = arith.addf %574, %575 : vector<1x128xf32>
    %577 = vector.broadcast %cst_17 : f32 to vector<1x128xf32>
    %578 = arith.mulf %577, %576 : vector<1x128xf32>
    %579 = vector.broadcast %cst_18 : f32 to vector<1x128xf32>
    %580 = arith.mulf %579, %540 : vector<1x128xf32>
    %581 = arith.addf %578, %580 : vector<1x128xf32>
    %582 = vector.broadcast %cst_19 : f32 to vector<1x128xf32>
    %583 = arith.mulf %582, %496 : vector<1x128xf32>
    %584 = arith.addf %581, %583 : vector<1x128xf32>
    %585 = arith.index_cast %c12_i32 : i32 to index
    %c0_95 = arith.constant 0 : index
    %586 = vector.load %arg3[%585, %c0_95] : memref<16x128xf32, #tpu.memory_space<vmem>>, vector<1x128xf32>
    tpu.vector_store %arg3[%585, %c0_95], %584 {strides = array<i32>} : memref<16x128xf32, #tpu.memory_space<vmem>>, vector<1x128xf32>,
    %c13_i32 = arith.constant 13 : i32
    %c16_i32_96 = arith.constant 16 : i32
    %587 = arith.muli %arg0, %c16_i32_96 : i32
    %588 = arith.addi %587, %c13_i32 : i32
    %589 = arith.index_cast %588 : i32 to index
    %590 = memref.load %arg1[%589] : memref<48xf32, #tpu.memory_space<smem>>
    %591 = vector.broadcast %590 : f32 to vector<1x128xf32>
    %592 = arith.mulf %591, %8 : vector<1x128xf32>
    %593 = vector.broadcast %cst : f32 to vector<1x128xf32>
    %594 = arith.mulf %593, %576 : vector<1x128xf32>
    %595 = arith.addf %584, %594 : vector<1x128xf32>
    %c1_i32_97 = arith.constant 1 : i32
    %596 = tpu.dynamic_rotate %595 by %c1_i32_97 dim 1 : vector<1x128xf32>, i32 -> vector<1x128xf32>
    %597 = arith.mulf %596, %4 : vector<1x128xf32>
    %598 = arith.mulf %595, %5 : vector<1x128xf32>
    %599 = arith.addf %597, %598 : vector<1x128xf32>
    %c127_i32_98 = arith.constant 127 : i32
    %600 = tpu.dynamic_rotate %595 by %c127_i32_98 dim 1 : vector<1x128xf32>, i32 -> vector<1x128xf32>
    %601 = arith.mulf %600, %6 : vector<1x128xf32>
    %602 = arith.addf %599, %601 : vector<1x128xf32>
    %c2_i32_99 = arith.constant 2 : i32
    %603 = tpu.dynamic_rotate %595 by %c2_i32_99 dim 1 : vector<1x128xf32>, i32 -> vector<1x128xf32>
    %604 = arith.mulf %603, %3 : vector<1x128xf32>
    %c126_i32_100 = arith.constant 126 : i32
    %605 = tpu.dynamic_rotate %595 by %c126_i32_100 dim 1 : vector<1x128xf32>, i32 -> vector<1x128xf32>
    %606 = arith.mulf %605, %7 : vector<1x128xf32>
    %607 = arith.addf %604, %606 : vector<1x128xf32>
    %608 = arith.addf %602, %607 : vector<1x128xf32>
    %609 = arith.addf %592, %608 : vector<1x128xf32>
    %610 = vector.broadcast %cst_17 : f32 to vector<1x128xf32>
    %611 = arith.mulf %610, %609 : vector<1x128xf32>
    %612 = vector.broadcast %cst_18 : f32 to vector<1x128xf32>
    %613 = arith.mulf %612, %576 : vector<1x128xf32>
    %614 = arith.addf %611, %613 : vector<1x128xf32>
    %615 = vector.broadcast %cst_19 : f32 to vector<1x128xf32>
    %616 = arith.mulf %615, %532 : vector<1x128xf32>
    %617 = arith.addf %614, %616 : vector<1x128xf32>
    %618 = arith.mulf %9, %617 : vector<1x128xf32>
    %619 = arith.mulf %10, %608 : vector<1x128xf32>
    %620 = arith.addf %618, %619 : vector<1x128xf32>
    %621 = vector.broadcast %cst_17 : f32 to vector<1x128xf32>
    %622 = arith.mulf %621, %620 : vector<1x128xf32>
    %623 = vector.broadcast %cst_18 : f32 to vector<1x128xf32>
    %624 = arith.mulf %623, %584 : vector<1x128xf32>
    %625 = arith.addf %622, %624 : vector<1x128xf32>
    %626 = vector.broadcast %cst_19 : f32 to vector<1x128xf32>
    %627 = arith.mulf %626, %540 : vector<1x128xf32>
    %628 = arith.addf %625, %627 : vector<1x128xf32>
    %629 = arith.index_cast %c13_i32 : i32 to index
    %c0_101 = arith.constant 0 : index
    %630 = vector.load %arg3[%629, %c0_101] : memref<16x128xf32, #tpu.memory_space<vmem>>, vector<1x128xf32>
    tpu.vector_store %arg3[%629, %c0_101], %628 {strides = array<i32>} : memref<16x128xf32, #tpu.memory_space<vmem>>, vector<1x128xf32>,
    %c14_i32 = arith.constant 14 : i32
    %c16_i32_102 = arith.constant 16 : i32
    %631 = arith.muli %arg0, %c16_i32_102 : i32
    %632 = arith.addi %631, %c14_i32 : i32
    %633 = arith.index_cast %632 : i32 to index
    %634 = memref.load %arg1[%633] : memref<48xf32, #tpu.memory_space<smem>>
    %635 = vector.broadcast %634 : f32 to vector<1x128xf32>
    %636 = arith.mulf %635, %8 : vector<1x128xf32>
    %637 = vector.broadcast %cst : f32 to vector<1x128xf32>
    %638 = arith.mulf %637, %620 : vector<1x128xf32>
    %639 = arith.addf %628, %638 : vector<1x128xf32>
    %c1_i32_103 = arith.constant 1 : i32
    %640 = tpu.dynamic_rotate %639 by %c1_i32_103 dim 1 : vector<1x128xf32>, i32 -> vector<1x128xf32>
    %641 = arith.mulf %640, %4 : vector<1x128xf32>
    %642 = arith.mulf %639, %5 : vector<1x128xf32>
    %643 = arith.addf %641, %642 : vector<1x128xf32>
    %c127_i32_104 = arith.constant 127 : i32
    %644 = tpu.dynamic_rotate %639 by %c127_i32_104 dim 1 : vector<1x128xf32>, i32 -> vector<1x128xf32>
    %645 = arith.mulf %644, %6 : vector<1x128xf32>
    %646 = arith.addf %643, %645 : vector<1x128xf32>
    %c2_i32_105 = arith.constant 2 : i32
    %647 = tpu.dynamic_rotate %639 by %c2_i32_105 dim 1 : vector<1x128xf32>, i32 -> vector<1x128xf32>
    %648 = arith.mulf %647, %3 : vector<1x128xf32>
    %c126_i32_106 = arith.constant 126 : i32
    %649 = tpu.dynamic_rotate %639 by %c126_i32_106 dim 1 : vector<1x128xf32>, i32 -> vector<1x128xf32>
    %650 = arith.mulf %649, %7 : vector<1x128xf32>
    %651 = arith.addf %648, %650 : vector<1x128xf32>
    %652 = arith.addf %646, %651 : vector<1x128xf32>
    %653 = arith.addf %636, %652 : vector<1x128xf32>
    %654 = vector.broadcast %cst_17 : f32 to vector<1x128xf32>
    %655 = arith.mulf %654, %653 : vector<1x128xf32>
    %656 = vector.broadcast %cst_18 : f32 to vector<1x128xf32>
    %657 = arith.mulf %656, %620 : vector<1x128xf32>
    %658 = arith.addf %655, %657 : vector<1x128xf32>
    %659 = vector.broadcast %cst_19 : f32 to vector<1x128xf32>
    %660 = arith.mulf %659, %576 : vector<1x128xf32>
    %661 = arith.addf %658, %660 : vector<1x128xf32>
    %662 = arith.mulf %9, %661 : vector<1x128xf32>
    %663 = arith.mulf %10, %652 : vector<1x128xf32>
    %664 = arith.addf %662, %663 : vector<1x128xf32>
    %665 = vector.broadcast %cst_17 : f32 to vector<1x128xf32>
    %666 = arith.mulf %665, %664 : vector<1x128xf32>
    %667 = vector.broadcast %cst_18 : f32 to vector<1x128xf32>
    %668 = arith.mulf %667, %628 : vector<1x128xf32>
    %669 = arith.addf %666, %668 : vector<1x128xf32>
    %670 = vector.broadcast %cst_19 : f32 to vector<1x128xf32>
    %671 = arith.mulf %670, %584 : vector<1x128xf32>
    %672 = arith.addf %669, %671 : vector<1x128xf32>
    %673 = arith.index_cast %c14_i32 : i32 to index
    %c0_107 = arith.constant 0 : index
    %674 = vector.load %arg3[%673, %c0_107] : memref<16x128xf32, #tpu.memory_space<vmem>>, vector<1x128xf32>
    tpu.vector_store %arg3[%673, %c0_107], %672 {strides = array<i32>} : memref<16x128xf32, #tpu.memory_space<vmem>>, vector<1x128xf32>,
    %c15_i32 = arith.constant 15 : i32
    %c16_i32_108 = arith.constant 16 : i32
    %675 = arith.muli %arg0, %c16_i32_108 : i32
    %676 = arith.addi %675, %c15_i32 : i32
    %677 = arith.index_cast %676 : i32 to index
    %678 = memref.load %arg1[%677] : memref<48xf32, #tpu.memory_space<smem>>
    %679 = vector.broadcast %678 : f32 to vector<1x128xf32>
    %680 = arith.mulf %679, %8 : vector<1x128xf32>
    %681 = vector.broadcast %cst : f32 to vector<1x128xf32>
    %682 = arith.mulf %681, %664 : vector<1x128xf32>
    %683 = arith.addf %672, %682 : vector<1x128xf32>
    %c1_i32_109 = arith.constant 1 : i32
    %684 = tpu.dynamic_rotate %683 by %c1_i32_109 dim 1 : vector<1x128xf32>, i32 -> vector<1x128xf32>
    %685 = arith.mulf %684, %4 : vector<1x128xf32>
    %686 = arith.mulf %683, %5 : vector<1x128xf32>
    %687 = arith.addf %685, %686 : vector<1x128xf32>
    %c127_i32_110 = arith.constant 127 : i32
    %688 = tpu.dynamic_rotate %683 by %c127_i32_110 dim 1 : vector<1x128xf32>, i32 -> vector<1x128xf32>
    %689 = arith.mulf %688, %6 : vector<1x128xf32>
    %690 = arith.addf %687, %689 : vector<1x128xf32>
    %c2_i32_111 = arith.constant 2 : i32
    %691 = tpu.dynamic_rotate %683 by %c2_i32_111 dim 1 : vector<1x128xf32>, i32 -> vector<1x128xf32>
    %692 = arith.mulf %691, %3 : vector<1x128xf32>
    %c126_i32_112 = arith.constant 126 : i32
    %693 = tpu.dynamic_rotate %683 by %c126_i32_112 dim 1 : vector<1x128xf32>, i32 -> vector<1x128xf32>
    %694 = arith.mulf %693, %7 : vector<1x128xf32>
    %695 = arith.addf %692, %694 : vector<1x128xf32>
    %696 = arith.addf %690, %695 : vector<1x128xf32>
    %697 = arith.addf %680, %696 : vector<1x128xf32>
    %698 = vector.broadcast %cst_17 : f32 to vector<1x128xf32>
    %699 = arith.mulf %698, %697 : vector<1x128xf32>
    %700 = vector.broadcast %cst_18 : f32 to vector<1x128xf32>
    %701 = arith.mulf %700, %664 : vector<1x128xf32>
    %702 = arith.addf %699, %701 : vector<1x128xf32>
    %703 = vector.broadcast %cst_19 : f32 to vector<1x128xf32>
    %704 = arith.mulf %703, %620 : vector<1x128xf32>
    %705 = arith.addf %702, %704 : vector<1x128xf32>
    %706 = arith.mulf %9, %705 : vector<1x128xf32>
    %707 = arith.mulf %10, %696 : vector<1x128xf32>
    %708 = arith.addf %706, %707 : vector<1x128xf32>
    %709 = vector.broadcast %cst_17 : f32 to vector<1x128xf32>
    %710 = arith.mulf %709, %708 : vector<1x128xf32>
    %711 = vector.broadcast %cst_18 : f32 to vector<1x128xf32>
    %712 = arith.mulf %711, %672 : vector<1x128xf32>
    %713 = arith.addf %710, %712 : vector<1x128xf32>
    %714 = vector.broadcast %cst_19 : f32 to vector<1x128xf32>
    %715 = arith.mulf %714, %628 : vector<1x128xf32>
    %716 = arith.addf %713, %715 : vector<1x128xf32>
    %717 = arith.index_cast %c15_i32 : i32 to index
    %c0_113 = arith.constant 0 : index
    %718 = vector.load %arg3[%717, %c0_113] : memref<16x128xf32, #tpu.memory_space<vmem>>, vector<1x128xf32>
    tpu.vector_store %arg3[%717, %c0_113], %716 {strides = array<i32>} : memref<16x128xf32, #tpu.memory_space<vmem>>, vector<1x128xf32>,
    %c16_i32_114 = arith.constant 16 : i32
    %c0_115 = arith.constant 0 : index
    %c0_116 = arith.constant 0 : index
    %719 = vector.load %arg4[%c0_115, %c0_116] : memref<1x128xf32, #tpu.memory_space<vmem>>, vector<1x128xf32>
    tpu.vector_store %arg4[%c0_115, %c0_116], %716 {strides = array<i32>} : memref<1x128xf32, #tpu.memory_space<vmem>>, vector<1x128xf32>,
    %c0_117 = arith.constant 0 : index
    %c0_118 = arith.constant 0 : index
    %720 = vector.load %arg5[%c0_117, %c0_118] : memref<1x128xf32, #tpu.memory_space<vmem>>, vector<1x128xf32>
    tpu.vector_store %arg5[%c0_117, %c0_118], %708 {strides = array<i32>} : memref<1x128xf32, #tpu.memory_space<vmem>>, vector<1x128xf32>,
    %c0_119 = arith.constant 0 : index
    %c0_120 = arith.constant 0 : index
    %721 = vector.load %arg6[%c0_119, %c0_120] : memref<1x128xf32, #tpu.memory_space<vmem>>, vector<1x128xf32>
    tpu.vector_store %arg6[%c0_119, %c0_120], %672 {strides = array<i32>} : memref<1x128xf32, #tpu.memory_space<vmem>>, vector<1x128xf32>,
    %c0_121 = arith.constant 0 : index
    %c0_122 = arith.constant 0 : index
    %722 = vector.load %arg7[%c0_121, %c0_122] : memref<1x128xf32, #tpu.memory_space<vmem>>, vector<1x128xf32>
    tpu.vector_store %arg7[%c0_121, %c0_122], %664 {strides = array<i32>} : memref<1x128xf32, #tpu.memory_space<vmem>>, vector<1x128xf32>,
    return
  }
  func.func @transform_0(%arg0: i32) -> i32 {
    %c0_i32 = arith.constant 0 : i32
    %c0_i32_0 = arith.constant 0 : i32
    return %c0_i32 : i32
  }
  func.func @transform_1(%arg0: i32) -> (i32, i32) {
    %c0_i32 = arith.constant 0 : i32
    %c0_i32_0 = arith.constant 0 : i32
    %c0_i32_1 = arith.constant 0 : i32
    return %c0_i32, %c0_i32_0 : i32, i32
  }
  func.func @transform_2(%arg0: i32) -> (i32, i32) {
    %c0_i32 = arith.constant 0 : i32
    %c0_i32_0 = arith.constant 0 : i32
    return %arg0, %c0_i32 : i32, i32
  }
}

</mosaic_0001>

<bundles_post_ra>
// kernel: tpu_custom_call.1
= control target key start
LH: loop header
LB: loop body
LE: loop exit
PB: predicated region body
PF: predicated region fallthrough
CT: control target
= control target key end

     0   :  { %7 = vsyncpa [#allocation9], 0  ;;  %s1618_s0 = inlined_call_operand.hbm [shape: f32[48], index: 0, kind: input, shape index: {}]   ;;  %s1619_s1 = inlined_call_operand.hbm [shape: f32[8,128], index: 1, kind: input, shape index: {}]   ;;  %s1620_s2 = inlined_call_operand.hbm [shape: f32[48,128], index: 2, kind: output, shape index: {}]  }
   0x1   :  { %8 = vsyncpa [#allocation7], 0 }
   0x2   :  { %9 = vsyncpa [#allocation8], 0 }
   0x3   :  { %11 = vsyncpa [#allocation8 + $0x1], 0  ;;  %s1106_s9 = smov 0   ;;  %s1108_s10 = smov 0  }
   0x4   :  { %s1110_s11 = smov 0   ;;  %s1112_s12 = smov 0  }
   0x5 LB: > { %s1127_s13 = sadd.s32 4294967295, %s1080_s12   ;;  %s874_s14 = sadd.s32 4294967294, %s1080_s12   ;;  %s1080_s12 = sphi %s1112_s12, %s1626_s12   ;;  %s1076_s11 = sphi %s1110_s11, %s1625_s11   ;;  %s1072_s10 = sphi %s1108_s10, %s1624_s10   ;;  %s1068_s9 = sphi %s1106_s9, %s1623_s9  }
   0x6   : > { %s1131_s15 = sadd.s32 1, %s1080_s12   ;;  %s66_s16 = sadd.s32 1, %s1076_s11 }
   0x7   : > { %s63_s17 = ssub.s32 %s1080_s12, %s1131_s15  ;;  %p76_p0 = scmp.ne.s32.totalorder %s1076_s11, %s1072_s10 }
   0x8   : > { %p64_p1 = scmp.eq.s32.totalorder %s63_s17, 0  ;;  %p77_p2 = scmp.eq.s32.totalorder %s1127_s13, 2 }
   0x9   : > { %p82_p3 = scmp.ne.s32.totalorder %s1072_s10, %s1068_s9  ;;  %p83_p4 = scmp.eq.s32.totalorder %s874_s14, 2 }
   0xa   : > { %s1142_s18 = scalar_select %p64_p1, %s1076_s11, %s66_s16  }
   0xb   : > { %p1144_p5 = por %p77_p2, %p76_p0  ;;  %p1148_p6 = por %p83_p4, %p82_p3 }
   0xc   : > { %p875_p7 = scmp.ge.s32.totalorder %s1080_s12, 1  ;;  %p90_p8 = scmp.lt.s32.totalorder %s1080_s12, 4 }
   0xd   : > { %p876_p9 = scmp.ne.s32.totalorder %s1127_s13, 0  ;;  %p911_p10 = scmp.eq.s32.totalorder %s1127_s13, 0 }
   0xe   : > { %p91_p11 = pnand %p875_p7, %p90_p8  ;;  %s102_s23 = sshll.u32 %s1618_s0, 4  ;;  %s103_s23 = int_to_ptr.hbm [resolvable:$true] %s102_s23 }
   0xf   : > { %s112_s26 = sshll.u32 %s1619_s1, 4  ;;  %s1082_s27 = smov [#allocation10]   ;;  %s113_s26 = int_to_ptr.hbm [resolvable:$true] %s112_s26 }
  0x10   : > { %p900_p12 = pneg %p91_p11  ;;  %s114_s28 = sshll.u32 %s1082_s27, 4  ;;  %s115_s28 = int_to_ptr.vmem [resolvable:$true] %s114_s28 }
  0x11   : > { %s1083_s29 = smov [#allocation6]   ;;  %127 = sbr.rel (%p91_p11) target bundleno = 2394 (0x95a), region = 28 }
  0x12   : > { %p901_p13 = pnand %p911_p10, %p900_p12 }
  0x14   : > { %903 = dma.hbm_to_smem (!%p901_p13), %s103_s23, 16, %s1083_s29, [#allocation9]  }
  0x15   : > { %906 = dma.hbm_to_vmem [thread:$0]  (!%p901_p13), %s113_s26, 128, %s115_s28, [#allocation7]  }
  0x16   : > { %1055 = dma.done.wait (%p911_p10), [#allocation9], 16  }
  0x17   : > { %1057 = vsyncadd (%p911_p10), [#allocation9], 4294967280 }
  0x18   : > { %1059 = dma.done.wait (%p911_p10), [#allocation7], 128  }
  0x19   : > { %1061 = vsyncadd (%p911_p10), [#allocation7], 4294967168 }
  0x1a   : > { %139 = sfence }
  0x1b   : > { %s148_s30 = sand.u32 1, %s1072_s10   ;;  %155 = sbr.rel (%p876_p9) target bundleno = 37 (0x25), region = 40 }
  0x1c   : > { %s881_s3 = sshll.u32 %s148_s30, 4 }
  0x1d   : > { %s1175_s4 = scalar_lea.vmem [#allocation11], %s881_s3 }
  0x20   : > { %v1084_v0 = vmov 0.0  }
  0x21   : > { %156 = vst [vmem:[#allocation2] sm:$0x1] %v1084_v0 }
  0x22   : > { %157 = vst [vmem:[#allocation3] sm:$0x1] %v1084_v0 }
  0x23   : > { %158 = vst [vmem:[#allocation4] sm:$0x1] %v1084_v0 }
  0x24   : > { %159 = vst [vmem:[#allocation5] sm:$0x1] %v1084_v0 }
  0x25 PF: > { %s1085_s5 = smov 2   ;;  %s1086_s6 = smov 1   ;;  %v1193_v7 = vld [vmem:[#allocation10 + $0x1] sm:$0x1]  ;;  %v1195_v8 = vld [vmem:[#allocation10 + $0x2] sm:$0x1] }
  0x26   : > { %s1087_s7 = smov 126   ;;  %s1088_s8 = smov 127   ;;  %v1199_v11 = vld [vmem:[#allocation10] sm:$0x1]  ;;  %v1201_v12 = vld [vmem:[#allocation10 + $0x4] sm:$0x1] }
  0x27   : > { %s1190_s14 = sshll.u32 %s1127_s13, 4  ;;  %v1203_v13 = vld [vmem:[#allocation10 + $0x3] sm:$0x1]  ;;  %v1205_v17 = vld [vmem:[#allocation10 + $0x5] sm:$0x1] }
  0x28   : > { %v1179_v1 = vld [vmem:[#allocation2] sm:$0x1]  ;;  %s173_s16 = sld [smem:[#allocation6 + %s1190_s14]]  ;;  %v1212_v32 = vld [vmem:[#allocation10 + $0x6] sm:$0x1]  ;;  %s210_s13 = sadd.s32 1, %s1190_s14 }
  0x29   : > { %v1181_v2 = vld [vmem:[#allocation3] sm:$0x1]  ;;  %v1214_v33 = vld [vmem:[#allocation10 + $0x7] sm:$0x1]  ;;  %v205_v38 = vmul.f32 1.3333334, %v1179_v1 }
  0x2a   : > { %v176_v3 = vmul.f32 0.004, %v1181_v2  ;;  %v197_v27 = vmul.f32 1.3333334, %v1181_v2  ;;  %v170_v37 = vld [vmem:[#allocation4] sm:$0x1] }
  0x2b   : > { %v171_v26 = vld [vmem:[#allocation5] sm:$0x1]  ;;  %v207_v41 = vmul.f32 -0.33333334, %v170_v37  ;;  %s211_s17 = sld [smem:[#allocation6 + %s210_s13]]  ;;  %s248_s21 = sadd.s32 2, %s1190_s14 }
  0x2c   : > { %v177_v4 = vadd.f32 %v176_v3, %v1179_v1  ;;  %v199_v29 = vmul.f32 -0.33333334, %v171_v26  ;;  %v237_v63 = vmul.f32 -0.33333334, %v1181_v2  ;;  %s249_s22 = sld [smem:[#allocation6 + %s248_s21]]  ;;  %s286_s23 = sadd.s32 3, %s1190_s14 }
  0x2d   : > { %s287_s24 = sld [smem:[#allocation6 + %s286_s23]]  ;;  %s324_s25 = sadd.s32 4, %s1190_s14 }
  0x2e   : > { %187 = vrot.lane.b32.xlu1 %v177_v4, %s1085_s5  ;;  %178 = vrot.lane.b32.xlu0 %v177_v4, %s1086_s6  ;;  %v181_v10 = vmul.f32 %v177_v4, %v1195_v8  ;;  %v174_v15 = vstv %s173_s16  ;;  %s325_s26 = sld [smem:[#allocation6 + %s324_s25]]  ;;  %s362_s27 = sadd.s32 5, %s1190_s14 }
  0x2f   : > { %v175_v23 = vmul.f32 %v174_v15, %v1205_v17  ;;  %s363_s28 = sld [smem:[#allocation6 + %s362_s27]]  ;;  %s400_s29 = sadd.s32 6, %s1190_s14 }
  0x30   : > { %s401_s3 = sld [smem:[#allocation6 + %s400_s29]]  ;;  %s438_s16 = sadd.s32 7, %s1190_s14 }
  0x31   : > { %v212_v52 = vstv %s211_s17  ;;  %s439_s13 = sld [smem:[#allocation6 + %s438_s16]]  ;;  %s476_s17 = sadd.s32 8, %s1190_s14 }
  0x32   : > { %v213_v58 = vmul.f32 %v212_v52, %v1205_v17  ;;  %s477_s21 = sld [smem:[#allocation6 + %s476_s17]] }
  0x36   : > { %190 = vrot.lane.b32.xlu1 %v177_v4, %s1087_s7  ;;  %183 = vrot.lane.b32.xlu0 %v177_v4, %s1088_s8 }
  0xa0   : > { %v188_v5 = vpop.permute.xlu1 %187  ;;  %v179_v6 = vpop.permute.xlu0 %178 }
  0xa1   : > { %v180_v9 = vmul.f32 %v179_v6, %v1193_v7  ;;  %v189_v18 = vmul.f32 %v188_v5, %v1199_v11 }
  0xa3   : > { %v182_v19 = vadd.f32 %v181_v10, %v180_v9  ;;  %v245_v10 = vmul.f32 -0.33333334, %v1179_v1 }
  0xa8   : > { %v191_v14 = vpop.permute.xlu1 %190  ;;  %v184_v16 = vpop.permute.xlu0 %183 }
  0xa9   : > { %v192_v20 = vmul.f32 %v191_v14, %v1201_v12  ;;  %v185_v21 = vmul.f32 %v184_v16, %v1203_v13 }
  0xab   : > { %v193_v22 = vadd.f32 %v192_v20, %v189_v18  ;;  %v186_v24 = vadd.f32 %v185_v21, %v182_v19 }
  0xad   : > { %v194_v25 = vadd.f32 %v193_v22, %v186_v24  ;;  %v250_v24 = vstv %s249_s22  ;;  %s514_s22 = sadd.s32 9, %s1190_s14 }
  0xae   : > { %s515_s23 = sld [smem:[#allocation6 + %s514_s22]] }
  0xaf   : > { %v195_v28 = vadd.f32 %v194_v25, %v175_v23  ;;  %v202_v36 = vmul.f32 %v194_v25, %v1214_v33 }
  0xb1   : > { %v196_v30 = vmul.f32 0.0026666666, %v195_v28 }
  0xb3   : > { %v198_v31 = vadd.f32 %v197_v27, %v196_v30 }
  0xb5   : > { %v200_v34 = vadd.f32 %v199_v29, %v198_v31  ;;  %v251_v31 = vmul.f32 %v250_v24, %v1205_v17 }
  0xb7   : > { %v201_v35 = vmul.f32 %v200_v34, %v1212_v32 }
  0xb9   : > { %v1219_v39 = vadd.f32 %v202_v36, %v201_v35 }
  0xbb   : > { %v204_v40 = vmul.f32 0.0026666666, %v1219_v39  ;;  %v214_v44 = vmul.f32 0.004, %v1219_v39  ;;  %v235_v62 = vmul.f32 1.3333334, %v1219_v39 }
  0xbd   : > { %v206_v42 = vadd.f32 %v205_v38, %v204_v40  ;;  %v275_v40 = vmul.f32 -0.33333334, %v1219_v39 }
  0xbf   : > { %v1222_v43 = vadd.f32 %v207_v41, %v206_v42 }
  0xc1   : > { %v215_v45 = vadd.f32 %v214_v44, %v1222_v43  ;;  %209 = vst [vmem:[%s1175_s4] sm:$0x1] %v1222_v43  ;;  %v243_v14 = vmul.f32 1.3333334, %v1222_v43 }
  0xc3   : > { %228 = vrot.lane.b32.xlu1 %v215_v45, %s1087_s7  ;;  %225 = vrot.lane.b32.xlu0 %v215_v45, %s1085_s5  ;;  %v219_v49 = vmul.f32 %v215_v45, %v1195_v8 }
  0xc4   : > { %216 = vrot.lane.b32.xlu2 %v215_v45, %s1086_s6 }
  0xcc   : > { %221 = vrot.lane.b32.xlu2 %v215_v45, %s1088_s8 }
 0x11e   : > { %v217_v46 = vpop.permute.xlu2 %216 }
 0x11f   : > { %v218_v48 = vmul.f32 %v217_v46, %v1193_v7 }
 0x121   : > { %v220_v54 = vadd.f32 %v219_v49, %v218_v48 }
 0x126   : > { %v222_v47 = vpop.permute.xlu2 %221 }
 0x127   : > { %v223_v50 = vmul.f32 %v222_v47, %v1203_v13 }
 0x129   : > { %v224_v57 = vadd.f32 %v223_v50, %v220_v54  ;;  %v283_v50 = vmul.f32 -0.33333334, %v1222_v43 }
 0x135   : > { %v229_v51 = vpop.permute.xlu1 %228  ;;  %v226_v53 = vpop.permute.xlu0 %225 }
 0x136   : > { %v230_v55 = vmul.f32 %v229_v51, %v1201_v12  ;;  %v227_v56 = vmul.f32 %v226_v53, %v1199_v11 }
 0x138   : > { %v231_v59 = vadd.f32 %v230_v55, %v227_v56 }
 0x13a   : > { %v232_v60 = vadd.f32 %v231_v59, %v224_v57 }
 0x13c   : > { %v233_v61 = vadd.f32 %v232_v60, %v213_v58  ;;  %v240_v6 = vmul.f32 %v232_v60, %v1214_v33  ;;  %v288_v58 = vstv %s287_s24  ;;  %s552_s24 = sadd.s32 10, %s1190_s14 }
 0x13d   : > { %s553_s25 = sld [smem:[#allocation6 + %s552_s24]]  ;;  %s785_s24 = scalar_lea.sflag [#allocation8], %s148_s30 }
 0x13e   : > { %v234_v0 = vmul.f32 0.0026666666, %v233_v61 }
 0x140   : > { %v236_v3 = vadd.f32 %v235_v62, %v234_v0  ;;  %v289_v0 = vmul.f32 %v288_v58, %v1205_v17 }
 0x142   : > { %v238_v4 = vadd.f32 %v237_v63, %v236_v3 }
 0x144   : > { %v239_v5 = vmul.f32 %v238_v4, %v1212_v32 }
 0x146   : > { %v1243_v9 = vadd.f32 %v240_v6, %v239_v5 }
 0x148   : > { %v242_v15 = vmul.f32 0.0026666666, %v1243_v9  ;;  %v252_v2 = vmul.f32 0.004, %v1243_v9  ;;  %v273_v37 = vmul.f32 1.3333334, %v1243_v9 }
 0x14a   : > { %v244_v16 = vadd.f32 %v243_v14, %v242_v15  ;;  %v313_v14 = vmul.f32 -0.33333334, %v1243_v9 }
 0x14c   : > { %v1248_v18 = vadd.f32 %v245_v10, %v244_v16 }
 0x14e   : > { %v253_v19 = vadd.f32 %v252_v2, %v1248_v18  ;;  %247 = vst [vmem:[%s1175_s4 + $0x1] sm:$0x1] %v1248_v18  ;;  %v281_v47 = vmul.f32 1.3333334, %v1248_v18 }
 0x150   : > { %263 = vrot.lane.b32.xlu1 %v253_v19, %s1085_s5  ;;  %259 = vrot.lane.b32.xlu0 %v253_v19, %s1088_s8  ;;  %v257_v22 = vmul.f32 %v253_v19, %v1195_v8 }
 0x151   : > { %254 = vrot.lane.b32.xlu2 %v253_v19, %s1086_s6 }
 0x159   : > { %266 = vrot.lane.b32.xlu2 %v253_v19, %s1087_s7 }
 0x1ab   : > { %v255_v1 = vpop.permute.xlu2 %254 }
 0x1ac   : > { %v256_v20 = vmul.f32 %v255_v1, %v1193_v7 }
 0x1ae   : > { %v258_v26 = vadd.f32 %v257_v22, %v256_v20 }
 0x1b3   : > { %v267_v21 = vpop.permute.xlu2 %266 }
 0x1b4   : > { %v268_v27 = vmul.f32 %v267_v21, %v1201_v12 }
 0x1c2   : > { %v264_v23 = vpop.permute.xlu1 %263  ;;  %v260_v25 = vpop.permute.xlu0 %259 }
 0x1c3   : > { %v265_v28 = vmul.f32 %v264_v23, %v1199_v11  ;;  %v261_v29 = vmul.f32 %v260_v25, %v1203_v13  ;;  %v321_v23 = vmul.f32 -0.33333334, %v1248_v18 }
 0x1c5   : > { %v269_v30 = vadd.f32 %v268_v27, %v265_v28  ;;  %v262_v34 = vadd.f32 %v261_v29, %v258_v26 }
 0x1c7   : > { %v270_v35 = vadd.f32 %v269_v30, %v262_v34 }
 0x1c9   : > { %v271_v36 = vadd.f32 %v270_v35, %v251_v31  ;;  %v278_v45 = vmul.f32 %v270_v35, %v1214_v33  ;;  %v326_v31 = vstv %s325_s26  ;;  %s590_s26 = sadd.s32 11, %s1190_s14 }
 0x1ca   : > { %s591_s27 = sld [smem:[#allocation6 + %s590_s26]] }
 0x1cb   : > { %v272_v38 = vmul.f32 0.0026666666, %v271_v36 }
 0x1cd   : > { %v274_v41 = vadd.f32 %v273_v37, %v272_v38 }
 0x1cf   : > { %v276_v42 = vadd.f32 %v275_v40, %v274_v41  ;;  %v327_v40 = vmul.f32 %v326_v31, %v1205_v17 }
 0x1d1   : > { %v277_v44 = vmul.f32 %v276_v42, %v1212_v32 }
 0x1d3   : > { %v1269_v46 = vadd.f32 %v278_v45, %v277_v44 }
 0x1d5   : > { %v280_v48 = vmul.f32 0.0026666666, %v1269_v46  ;;  %v290_v39 = vmul.f32 0.004, %v1269_v46  ;;  %v311_v6 = vmul.f32 1.3333334, %v1269_v46 }
 0x1d7   : > { %v282_v49 = vadd.f32 %v281_v47, %v280_v48  ;;  %v351_v48 = vmul.f32 -0.33333334, %v1269_v46 }
 0x1d9   : > { %v1274_v51 = vadd.f32 %v283_v50, %v282_v49 }
 0x1db   : > { %v291_v52 = vadd.f32 %v290_v39, %v1274_v51  ;;  %285 = vst [vmem:[%s1175_s4 + $0x2] sm:$0x1] %v1274_v51  ;;  %v319_v20 = vmul.f32 1.3333334, %v1274_v51 }
 0x1dd   : > { %301 = vrot.lane.b32.xlu2 %v291_v52, %s1085_s5  ;;  %297 = vrot.lane.b32.xlu1 %v291_v52, %s1088_s8  ;;  %v295_v54 = vmul.f32 %v291_v52, %v1195_v8 }
 0x1de   : > { %292 = vrot.lane.b32.xlu0 %v291_v52, %s1086_s6 }
 0x1e6   : > { %304 = vrot.lane.b32.xlu0 %v291_v52, %s1087_s7 }
 0x237   : > { %v302_v55 = vpop.permute.xlu2 %301 }
 0x238   : > { %v303_v60 = vmul.f32 %v302_v55, %v1199_v11 }
 0x24f   : > { %v298_v56 = vpop.permute.xlu1 %297 }
 0x250   : > { %v293_v53 = vpop.permute.xlu0 %292  ;;  %v299_v61 = vmul.f32 %v298_v56, %v1203_v13  ;;  %v359_v56 = vmul.f32 -0.33333334, %v1274_v51 }
 0x251   : > { %v294_v43 = vmul.f32 %v293_v53, %v1193_v7 }
 0x253   : > { %v296_v57 = vadd.f32 %v295_v54, %v294_v43 }
 0x255   : > { %v300_v63 = vadd.f32 %v299_v61, %v296_v57 }
 0x258   : > { %v305_v59 = vpop.permute.xlu0 %304 }
 0x259   : > { %v306_v62 = vmul.f32 %v305_v59, %v1201_v12 }
 0x25b   : > { %v307_v3 = vadd.f32 %v306_v62, %v303_v60 }
 0x25d   : > { %v308_v4 = vadd.f32 %v307_v3, %v300_v63  ;;  %v364_v63 = vstv %s363_s28  ;;  %s628_s28 = sadd.s32 12, %s1190_s14 }
 0x25e   : > { %s629_s29 = sld [smem:[#allocation6 + %s628_s28]]  ;;  %s1030_s28 = scalar_lea.hbm %s1620_s2, 48 }
 0x25f   : > { %v309_v5 = vadd.f32 %v308_v4, %v289_v0  ;;  %v316_v19 = vmul.f32 %v308_v4, %v1214_v33 }
 0x261   : > { %v310_v10 = vmul.f32 0.0026666666, %v309_v5 }
 0x263   : > { %v312_v15 = vadd.f32 %v311_v6, %v310_v10 }
 0x265   : > { %v314_v16 = vadd.f32 %v313_v14, %v312_v15  ;;  %v365_v14 = vmul.f32 %v364_v63, %v1205_v17 }
 0x267   : > { %v315_v2 = vmul.f32 %v314_v16, %v1212_v32 }
 0x269   : > { %v1295_v1 = vadd.f32 %v316_v19, %v315_v2 }
 0x26b   : > { %v318_v21 = vmul.f32 0.0026666666, %v1295_v1  ;;  %v328_v9 = vmul.f32 0.004, %v1295_v1  ;;  %v349_v45 = vmul.f32 1.3333334, %v1295_v1 }
 0x26d   : > { %v320_v22 = vadd.f32 %v319_v20, %v318_v21  ;;  %v389_v21 = vmul.f32 -0.33333334, %v1295_v1 }
 0x26f   : > { %v1300_v24 = vadd.f32 %v321_v23, %v320_v22 }
 0x271   : > { %v329_v25 = vadd.f32 %v328_v9, %v1300_v24  ;;  %323 = vst [vmem:[%s1175_s4 + $0x3] sm:$0x1] %v1300_v24  ;;  %v357_v43 = vmul.f32 1.3333334, %v1300_v24 }
 0x273   : > { %339 = vrot.lane.b32.xlu0 %v329_v25, %s1085_s5  ;;  %335 = vrot.lane.b32.xlu2 %v329_v25, %s1088_s8  ;;  %v333_v27 = vmul.f32 %v329_v25, %v1195_v8 }
 0x274   : > { %330 = vrot.lane.b32.xlu1 %v329_v25, %s1086_s6 }
 0x27c   : > { %342 = vrot.lane.b32.xlu1 %v329_v25, %s1087_s7 }
 0x2cd   : > { %v336_v28 = vpop.permute.xlu2 %335 }
 0x2ce   : > { %v337_v35 = vmul.f32 %v336_v28, %v1203_v13 }
 0x2e5   : > { %v340_v29 = vpop.permute.xlu0 %339 }
 0x2e6   : > { %v331_v26 = vpop.permute.xlu1 %330  ;;  %v341_v36 = vmul.f32 %v340_v29, %v1199_v11  ;;  %v397_v29 = vmul.f32 -0.33333334, %v1300_v24 }
 0x2e7   : > { %v332_v18 = vmul.f32 %v331_v26, %v1193_v7 }
 0x2e9   : > { %v334_v30 = vadd.f32 %v333_v27, %v332_v18 }
 0x2eb   : > { %v338_v38 = vadd.f32 %v337_v35, %v334_v30 }
 0x2ee   : > { %v343_v34 = vpop.permute.xlu1 %342 }
 0x2ef   : > { %v344_v37 = vmul.f32 %v343_v34, %v1201_v12 }
 0x2f1   : > { %v345_v41 = vadd.f32 %v344_v37, %v341_v36 }
 0x2f3   : > { %v346_v42 = vadd.f32 %v345_v41, %v338_v38 }
 0x2f5   : > { %v347_v44 = vadd.f32 %v346_v42, %v327_v40  ;;  %v354_v52 = vmul.f32 %v346_v42, %v1214_v33  ;;  %v402_v40 = vstv %s401_s3  ;;  %s666_s3 = sadd.s32 13, %s1190_s14 }
 0x2f6   : > { %s667_s16 = sld [smem:[#allocation6 + %s666_s3]] }
 0x2f7   : > { %v348_v47 = vmul.f32 0.0026666666, %v347_v44 }
 0x2f9   : > { %v350_v49 = vadd.f32 %v349_v45, %v348_v47 }
 0x2fb   : > { %v352_v50 = vadd.f32 %v351_v48, %v350_v49  ;;  %v403_v48 = vmul.f32 %v402_v40, %v1205_v17 }
 0x2fd   : > { %v353_v39 = vmul.f32 %v352_v50, %v1212_v32 }
 0x2ff   : > { %v1321_v53 = vadd.f32 %v354_v52, %v353_v39 }
 0x301   : > { %v356_v54 = vmul.f32 0.0026666666, %v1321_v53  ;;  %v366_v46 = vmul.f32 0.004, %v1321_v53  ;;  %v387_v19 = vmul.f32 1.3333334, %v1321_v53 }
 0x303   : > { %v358_v55 = vadd.f32 %v357_v43, %v356_v54  ;;  %v427_v54 = vmul.f32 -0.33333334, %v1321_v53 }
 0x305   : > { %v1326_v57 = vadd.f32 %v359_v56, %v358_v55 }
 0x307   : > { %v367_v58 = vadd.f32 %v366_v46, %v1326_v57  ;;  %361 = vst [vmem:[%s1175_s4 + $0x4] sm:$0x1] %v1326_v57  ;;  %v395_v18 = vmul.f32 1.3333334, %v1326_v57 }
 0x309   : > { %377 = vrot.lane.b32.xlu1 %v367_v58, %s1085_s5  ;;  %373 = vrot.lane.b32.xlu0 %v367_v58, %s1088_s8  ;;  %v371_v61 = vmul.f32 %v367_v58, %v1195_v8 }
 0x30a   : > { %368 = vrot.lane.b32.xlu2 %v367_v58, %s1086_s6 }
 0x312   : > { %380 = vrot.lane.b32.xlu2 %v367_v58, %s1087_s7 }
 0x364   : > { %v369_v59 = vpop.permute.xlu2 %368 }
 0x365   : > { %v370_v51 = vmul.f32 %v369_v59, %v1193_v7 }
 0x367   : > { %v372_v3 = vadd.f32 %v371_v61, %v370_v51 }
 0x36c   : > { %v381_v60 = vpop.permute.xlu2 %380 }
 0x36d   : > { %v382_v4 = vmul.f32 %v381_v60, %v1201_v12 }
 0x37b   : > { %v378_v62 = vpop.permute.xlu1 %377  ;;  %v374_v0 = vpop.permute.xlu0 %373 }
 0x37c   : > { %v379_v5 = vmul.f32 %v378_v62, %v1199_v11  ;;  %v375_v6 = vmul.f32 %v374_v0, %v1203_v13  ;;  %v435_v62 = vmul.f32 -0.33333334, %v1326_v57 }
 0x37e   : > { %v383_v10 = vadd.f32 %v382_v4, %v379_v5  ;;  %v376_v15 = vadd.f32 %v375_v6, %v372_v3 }
 0x380   : > { %v384_v16 = vadd.f32 %v383_v10, %v376_v15 }
 0x382   : > { %v385_v2 = vadd.f32 %v384_v16, %v365_v14  ;;  %v392_v25 = vmul.f32 %v384_v16, %v1214_v33  ;;  %v440_v14 = vstv %s439_s13  ;;  %s704_s13 = sadd.s32 14, %s1190_s14 }
 0x383   : > { %s705_s17 = sld [smem:[#allocation6 + %s704_s13]] }
 0x384   : > { %v386_v20 = vmul.f32 0.0026666666, %v385_v2 }
 0x386   : > { %v388_v22 = vadd.f32 %v387_v19, %v386_v20 }
 0x388   : > { %v390_v23 = vadd.f32 %v389_v21, %v388_v22  ;;  %v441_v21 = vmul.f32 %v440_v14, %v1205_v17 }
 0x38a   : > { %v391_v9 = vmul.f32 %v390_v23, %v1212_v32 }
 0x38c   : > { %v1347_v26 = vadd.f32 %v392_v25, %v391_v9 }
 0x38e   : > { %v394_v27 = vmul.f32 0.0026666666, %v1347_v26  ;;  %v404_v1 = vmul.f32 0.004, %v1347_v26  ;;  %v425_v52 = vmul.f32 1.3333334, %v1347_v26 }
 0x390   : > { %v396_v28 = vadd.f32 %v395_v18, %v394_v27  ;;  %v465_v27 = vmul.f32 -0.33333334, %v1347_v26 }
 0x392   : > { %v1352_v30 = vadd.f32 %v397_v29, %v396_v28 }
 0x394   : > { %v405_v31 = vadd.f32 %v404_v1, %v1352_v30  ;;  %399 = vst [vmem:[%s1175_s4 + $0x5] sm:$0x1] %v1352_v30  ;;  %v433_v51 = vmul.f32 1.3333334, %v1352_v30 }
 0x396   : > { %415 = vrot.lane.b32.xlu2 %v405_v31, %s1085_s5  ;;  %411 = vrot.lane.b32.xlu1 %v405_v31, %s1088_s8  ;;  %v409_v35 = vmul.f32 %v405_v31, %v1195_v8 }
 0x397   : > { %406 = vrot.lane.b32.xlu0 %v405_v31, %s1086_s6 }
 0x39f   : > { %418 = vrot.lane.b32.xlu0 %v405_v31, %s1087_s7 }
 0x3f0   : > { %v416_v36 = vpop.permute.xlu2 %415 }
 0x3f1   : > { %v417_v42 = vmul.f32 %v416_v36, %v1199_v11 }
 0x408   : > { %v412_v37 = vpop.permute.xlu1 %411 }
 0x409   : > { %v407_v34 = vpop.permute.xlu0 %406  ;;  %v413_v44 = vmul.f32 %v412_v37, %v1203_v13  ;;  %v473_v37 = vmul.f32 -0.33333334, %v1352_v30 }
 0x40a   : > { %v408_v24 = vmul.f32 %v407_v34, %v1193_v7 }
 0x40c   : > { %v410_v38 = vadd.f32 %v409_v35, %v408_v24 }
 0x40e   : > { %v414_v47 = vadd.f32 %v413_v44, %v410_v38 }
 0x411   : > { %v419_v41 = vpop.permute.xlu0 %418 }
 0x412   : > { %v420_v45 = vmul.f32 %v419_v41, %v1201_v12 }
 0x414   : > { %v421_v49 = vadd.f32 %v420_v45, %v417_v42 }
 0x416   : > { %v422_v50 = vadd.f32 %v421_v49, %v414_v47  ;;  %v478_v47 = vstv %s477_s21  ;;  %s742_s21 = sadd.s32 15, %s1190_s14 }
 0x417   : > { %s743_s22 = sld [smem:[#allocation6 + %s742_s21]] }
 0x418   : > { %v423_v39 = vadd.f32 %v422_v50, %v403_v48  ;;  %v430_v58 = vmul.f32 %v422_v50, %v1214_v33 }
 0x41a   : > { %v424_v43 = vmul.f32 0.0026666666, %v423_v39 }
 0x41c   : > { %v426_v55 = vadd.f32 %v425_v52, %v424_v43 }
 0x41e   : > { %v428_v56 = vadd.f32 %v427_v54, %v426_v55  ;;  %v479_v54 = vmul.f32 %v478_v47, %v1205_v17 }
 0x420   : > { %v429_v46 = vmul.f32 %v428_v56, %v1212_v32 }
 0x422   : > { %v1373_v59 = vadd.f32 %v430_v58, %v429_v46 }
 0x424   : > { %v432_v60 = vmul.f32 0.0026666666, %v1373_v59  ;;  %v442_v53 = vmul.f32 0.004, %v1373_v59  ;;  %v463_v25 = vmul.f32 1.3333334, %v1373_v59 }
 0x426   : > { %v434_v61 = vadd.f32 %v433_v51, %v432_v60  ;;  %v503_v60 = vmul.f32 -0.33333334, %v1373_v59 }
 0x428   : > { %v1378_v63 = vadd.f32 %v435_v62, %v434_v61 }
 0x42a   : > { %v443_v0 = vadd.f32 %v442_v53, %v1378_v63  ;;  %437 = vst [vmem:[%s1175_s4 + $0x6] sm:$0x1] %v1378_v63  ;;  %v471_v24 = vmul.f32 1.3333334, %v1378_v63 }
 0x42c   : > { %453 = vrot.lane.b32.xlu0 %v443_v0, %s1085_s5  ;;  %449 = vrot.lane.b32.xlu2 %v443_v0, %s1088_s8  ;;  %v447_v4 = vmul.f32 %v443_v0, %v1195_v8 }
 0x42d   : > { %444 = vrot.lane.b32.xlu1 %v443_v0, %s1086_s6 }
 0x435   : > { %456 = vrot.lane.b32.xlu1 %v443_v0, %s1087_s7 }
 0x486   : > { %v450_v5 = vpop.permute.xlu2 %449 }
 0x487   : > { %v451_v16 = vmul.f32 %v450_v5, %v1203_v13 }
 0x49e   : > { %v454_v6 = vpop.permute.xlu0 %453 }
 0x49f   : > { %v445_v3 = vpop.permute.xlu1 %444  ;;  %v455_v2 = vmul.f32 %v454_v6, %v1199_v11  ;;  %v511_v6 = vmul.f32 -0.33333334, %v1378_v63 }
 0x4a0   : > { %v446_v57 = vmul.f32 %v445_v3, %v1193_v7 }
 0x4a2   : > { %v448_v10 = vadd.f32 %v447_v4, %v446_v57 }
 0x4a4   : > { %v452_v20 = vadd.f32 %v451_v16, %v448_v10 }
 0x4a7   : > { %v457_v15 = vpop.permute.xlu1 %456 }
 0x4a8   : > { %v458_v19 = vmul.f32 %v457_v15, %v1201_v12 }
 0x4aa   : > { %v459_v22 = vadd.f32 %v458_v19, %v455_v2 }
 0x4ac   : > { %v460_v23 = vadd.f32 %v459_v22, %v452_v20 }
 0x4ae   : > { %v461_v9 = vadd.f32 %v460_v23, %v441_v21  ;;  %v468_v31 = vmul.f32 %v460_v23, %v1214_v33  ;;  %v516_v21 = vstv %s515_s23 }
 0x4b0   : > { %v462_v18 = vmul.f32 0.0026666666, %v461_v9 }
 0x4b2   : > { %v464_v28 = vadd.f32 %v463_v25, %v462_v18 }
 0x4b4   : > { %v466_v29 = vadd.f32 %v465_v27, %v464_v28  ;;  %v517_v27 = vmul.f32 %v516_v21, %v1205_v17 }
 0x4b6   : > { %v467_v1 = vmul.f32 %v466_v29, %v1212_v32 }
 0x4b8   : > { %v1399_v34 = vadd.f32 %v468_v31, %v467_v1 }
 0x4ba   : > { %v470_v35 = vmul.f32 0.0026666666, %v1399_v34  ;;  %v480_v26 = vmul.f32 0.004, %v1399_v34  ;;  %v501_v58 = vmul.f32 1.3333334, %v1399_v34 }
 0x4bc   : > { %v472_v36 = vadd.f32 %v471_v24, %v470_v35  ;;  %v541_v35 = vmul.f32 -0.33333334, %v1399_v34 }
 0x4be   : > { %v1404_v38 = vadd.f32 %v473_v37, %v472_v36 }
 0x4c0   : > { %v481_v40 = vadd.f32 %v480_v26, %v1404_v38  ;;  %475 = vst [vmem:[%s1175_s4 + $0x7] sm:$0x1] %v1404_v38  ;;  %v509_v57 = vmul.f32 1.3333334, %v1404_v38 }
 0x4c2   : > { %491 = vrot.lane.b32.xlu1 %v481_v40, %s1085_s5  ;;  %487 = vrot.lane.b32.xlu0 %v481_v40, %s1088_s8  ;;  %v485_v44 = vmul.f32 %v481_v40, %v1195_v8 }
 0x4c3   : > { %482 = vrot.lane.b32.xlu2 %v481_v40, %s1086_s6 }
 0x4cb   : > { %494 = vrot.lane.b32.xlu2 %v481_v40, %s1087_s7 }
 0x51d   : > { %v483_v41 = vpop.permute.xlu2 %482 }
 0x51e   : > { %v484_v30 = vmul.f32 %v483_v41, %v1193_v7 }
 0x520   : > { %v486_v49 = vadd.f32 %v485_v44, %v484_v30 }
 0x525   : > { %v495_v42 = vpop.permute.xlu2 %494 }
 0x526   : > { %v496_v50 = vmul.f32 %v495_v42, %v1201_v12 }
 0x534   : > { %v492_v45 = vpop.permute.xlu1 %491  ;;  %v488_v48 = vpop.permute.xlu0 %487 }
 0x535   : > { %v493_v39 = vmul.f32 %v492_v45, %v1199_v11  ;;  %v489_v52 = vmul.f32 %v488_v48, %v1203_v13  ;;  %v549_v45 = vmul.f32 -0.33333334, %v1404_v38 }
 0x537   : > { %v497_v43 = vadd.f32 %v496_v50, %v493_v39  ;;  %v490_v55 = vadd.f32 %v489_v52, %v486_v49 }
 0x539   : > { %v498_v56 = vadd.f32 %v497_v43, %v490_v55 }
 0x53b   : > { %v499_v46 = vadd.f32 %v498_v56, %v479_v54  ;;  %v506_v0 = vmul.f32 %v498_v56, %v1214_v33  ;;  %v554_v54 = vstv %s553_s25 }
 0x53d   : > { %v500_v51 = vmul.f32 0.0026666666, %v499_v46 }
 0x53f   : > { %v502_v61 = vadd.f32 %v501_v58, %v500_v51 }
 0x541   : > { %v504_v62 = vadd.f32 %v503_v60, %v502_v61  ;;  %v555_v60 = vmul.f32 %v554_v54, %v1205_v17 }
 0x543   : > { %v505_v53 = vmul.f32 %v504_v62, %v1212_v32 }
 0x545   : > { %v1425_v3 = vadd.f32 %v506_v0, %v505_v53 }
 0x547   : > { %v508_v4 = vmul.f32 0.0026666666, %v1425_v3  ;;  %v518_v59 = vmul.f32 0.004, %v1425_v3  ;;  %v539_v31 = vmul.f32 1.3333334, %v1425_v3 }
 0x549   : > { %v510_v5 = vadd.f32 %v509_v57, %v508_v4  ;;  %v579_v4 = vmul.f32 -0.33333334, %v1425_v3 }
 0x54b   : > { %v1430_v10 = vadd.f32 %v511_v6, %v510_v5 }
 0x54d   : > { %v519_v14 = vadd.f32 %v518_v59, %v1430_v10  ;;  %513 = vst [vmem:[%s1175_s4 + $0x8] sm:$0x1] %v1430_v10  ;;  %v547_v30 = vmul.f32 1.3333334, %v1430_v10 }
 0x54f   : > { %529 = vrot.lane.b32.xlu2 %v519_v14, %s1085_s5  ;;  %525 = vrot.lane.b32.xlu1 %v519_v14, %s1088_s8  ;;  %v523_v16 = vmul.f32 %v519_v14, %v1195_v8 }
 0x550   : > { %520 = vrot.lane.b32.xlu0 %v519_v14, %s1086_s6 }
 0x558   : > { %532 = vrot.lane.b32.xlu0 %v519_v14, %s1087_s7 }
 0x5a9   : > { %v530_v2 = vpop.permute.xlu2 %529 }
 0x5aa   : > { %v531_v23 = vmul.f32 %v530_v2, %v1199_v11 }
 0x5c1   : > { %v526_v19 = vpop.permute.xlu1 %525 }
 0x5c2   : > { %v521_v15 = vpop.permute.xlu0 %520  ;;  %v527_v9 = vmul.f32 %v526_v19, %v1203_v13  ;;  %v587_v19 = vmul.f32 -0.33333334, %v1430_v10 }
 0x5c3   : > { %v522_v63 = vmul.f32 %v521_v15, %v1193_v7 }
 0x5c5   : > { %v524_v20 = vadd.f32 %v523_v16, %v522_v63 }
 0x5c7   : > { %v528_v18 = vadd.f32 %v527_v9, %v524_v20 }
 0x5ca   : > { %v533_v22 = vpop.permute.xlu0 %532 }
 0x5cb   : > { %v534_v25 = vmul.f32 %v533_v22, %v1201_v12 }
 0x5cd   : > { %v535_v28 = vadd.f32 %v534_v25, %v531_v23 }
 0x5cf   : > { %v536_v29 = vadd.f32 %v535_v28, %v528_v18  ;;  %v592_v18 = vstv %s591_s27 }
 0x5d1   : > { %v537_v1 = vadd.f32 %v536_v29, %v517_v27  ;;  %v544_v40 = vmul.f32 %v536_v29, %v1214_v33 }
 0x5d3   : > { %v538_v24 = vmul.f32 0.0026666666, %v537_v1 }
 0x5d5   : > { %v540_v36 = vadd.f32 %v539_v31, %v538_v24 }
 0x5d7   : > { %v542_v37 = vadd.f32 %v541_v35, %v540_v36  ;;  %v593_v35 = vmul.f32 %v592_v18, %v1205_v17 }
 0x5d9   : > { %v543_v26 = vmul.f32 %v542_v37, %v1212_v32 }
 0x5db   : > { %v1451_v41 = vadd.f32 %v544_v40, %v543_v26 }
 0x5dd   : > { %v546_v42 = vmul.f32 0.0026666666, %v1451_v41  ;;  %v556_v34 = vmul.f32 0.004, %v1451_v41  ;;  %v577_v0 = vmul.f32 1.3333334, %v1451_v41 }
 0x5df   : > { %v548_v44 = vadd.f32 %v547_v30, %v546_v42  ;;  %v617_v42 = vmul.f32 -0.33333334, %v1451_v41 }
 0x5e1   : > { %v1456_v47 = vadd.f32 %v549_v45, %v548_v44 }
 0x5e3   : > { %v557_v48 = vadd.f32 %v556_v34, %v1456_v47  ;;  %551 = vst [vmem:[%s1175_s4 + $0x9] sm:$0x1] %v1456_v47  ;;  %v585_v63 = vmul.f32 1.3333334, %v1456_v47 }
 0x5e5   : > { %567 = vrot.lane.b32.xlu0 %v557_v48, %s1085_s5  ;;  %563 = vrot.lane.b32.xlu2 %v557_v48, %s1088_s8  ;;  %v561_v50 = vmul.f32 %v557_v48, %v1195_v8 }
 0x5e6   : > { %558 = vrot.lane.b32.xlu1 %v557_v48, %s1086_s6 }
 0x5ee   : > { %570 = vrot.lane.b32.xlu1 %v557_v48, %s1087_s7 }
 0x63f   : > { %v564_v39 = vpop.permute.xlu2 %563 }
 0x640   : > { %v565_v56 = vmul.f32 %v564_v39, %v1203_v13 }
 0x657   : > { %v568_v52 = vpop.permute.xlu0 %567 }
 0x658   : > { %v559_v49 = vpop.permute.xlu1 %558  ;;  %v569_v46 = vmul.f32 %v568_v52, %v1199_v11  ;;  %v625_v52 = vmul.f32 -0.33333334, %v1456_v47 }
 0x659   : > { %v560_v38 = vmul.f32 %v559_v49, %v1193_v7 }
 0x65b   : > { %v562_v43 = vadd.f32 %v561_v50, %v560_v38 }
 0x65d   : > { %v566_v51 = vadd.f32 %v565_v56, %v562_v43 }
 0x660   : > { %v571_v55 = vpop.permute.xlu1 %570 }
 0x661   : > { %v572_v58 = vmul.f32 %v571_v55, %v1201_v12 }
 0x663   : > { %v573_v61 = vadd.f32 %v572_v58, %v569_v46 }
 0x665   : > { %v574_v62 = vadd.f32 %v573_v61, %v566_v51 }
 0x667   : > { %v575_v53 = vadd.f32 %v574_v62, %v555_v60  ;;  %v582_v14 = vmul.f32 %v574_v62, %v1214_v33  ;;  %v630_v60 = vstv %s629_s29 }
 0x669   : > { %v576_v57 = vmul.f32 0.0026666666, %v575_v53 }
 0x66b   : > { %v578_v5 = vadd.f32 %v577_v0, %v576_v57 }
 0x66d   : > { %v580_v6 = vadd.f32 %v579_v4, %v578_v5  ;;  %v631_v4 = vmul.f32 %v630_v60, %v1205_v17 }
 0x66f   : > { %v581_v59 = vmul.f32 %v580_v6, %v1212_v32 }
 0x671   : > { %v1477_v15 = vadd.f32 %v582_v14, %v581_v59 }
 0x673   : > { %v584_v16 = vmul.f32 0.0026666666, %v1477_v15  ;;  %v594_v3 = vmul.f32 0.004, %v1477_v15  ;;  %v615_v40 = vmul.f32 1.3333334, %v1477_v15 }
 0x675   : > { %v586_v2 = vadd.f32 %v585_v63, %v584_v16  ;;  %v655_v16 = vmul.f32 -0.33333334, %v1477_v15 }
 0x677   : > { %v1482_v20 = vadd.f32 %v587_v19, %v586_v2 }
 0x679   : > { %v595_v21 = vadd.f32 %v594_v3, %v1482_v20  ;;  %589 = vst [vmem:[%s1175_s4 + $0xa] sm:$0x1] %v1482_v20  ;;  %v623_v38 = vmul.f32 1.3333334, %v1482_v20 }
 0x67b   : > { %605 = vrot.lane.b32.xlu1 %v595_v21, %s1085_s5  ;;  %601 = vrot.lane.b32.xlu0 %v595_v21, %s1088_s8  ;;  %v599_v9 = vmul.f32 %v595_v21, %v1195_v8 }
 0x67c   : > { %596 = vrot.lane.b32.xlu2 %v595_v21, %s1086_s6 }
 0x684   : > { %608 = vrot.lane.b32.xlu2 %v595_v21, %s1087_s7 }
 0x6d6   : > { %v597_v22 = vpop.permute.xlu2 %596 }
 0x6d7   : > { %v598_v10 = vmul.f32 %v597_v22, %v1193_v7 }
 0x6d9   : > { %v600_v28 = vadd.f32 %v599_v9, %v598_v10 }
 0x6de   : > { %v609_v23 = vpop.permute.xlu2 %608 }
 0x6df   : > { %v610_v29 = vmul.f32 %v609_v23, %v1201_v12 }
 0x6ed   : > { %v606_v25 = vpop.permute.xlu1 %605  ;;  %v602_v27 = vpop.permute.xlu0 %601 }
 0x6ee   : > { %v607_v1 = vmul.f32 %v606_v25, %v1199_v11  ;;  %v603_v31 = vmul.f32 %v602_v27, %v1203_v13  ;;  %v663_v25 = vmul.f32 -0.33333334, %v1482_v20 }
 0x6f0   : > { %v611_v24 = vadd.f32 %v610_v29, %v607_v1  ;;  %v604_v36 = vadd.f32 %v603_v31, %v600_v28 }
 0x6f2   : > { %v612_v37 = vadd.f32 %v611_v24, %v604_v36 }
 0x6f4   : > { %v613_v26 = vadd.f32 %v612_v37, %v593_v35  ;;  %v620_v48 = vmul.f32 %v612_v37, %v1214_v33  ;;  %v668_v35 = vstv %s667_s16 }
 0x6f6   : > { %v614_v30 = vmul.f32 0.0026666666, %v613_v26 }
 0x6f8   : > { %v616_v44 = vadd.f32 %v615_v40, %v614_v30 }
 0x6fa   : > { %v618_v45 = vadd.f32 %v617_v42, %v616_v44  ;;  %v669_v42 = vmul.f32 %v668_v35, %v1205_v17 }
 0x6fc   : > { %v619_v34 = vmul.f32 %v618_v45, %v1212_v32 }
 0x6fe   : > { %v1503_v49 = vadd.f32 %v620_v48, %v619_v34 }
 0x700   : > { %v622_v50 = vmul.f32 0.0026666666, %v1503_v49  ;;  %v632_v41 = vmul.f32 0.004, %v1503_v49  ;;  %v653_v14 = vmul.f32 1.3333334, %v1503_v49 }
 0x701   : > { %v693_v48 = vmul.f32 -0.33333334, %v1503_v49 }
 0x702   : > { %v624_v39 = vadd.f32 %v623_v38, %v622_v50 }
 0x704   : > { %v1508_v43 = vadd.f32 %v625_v52, %v624_v39 }
 0x706   : > { %v633_v54 = vadd.f32 %v632_v41, %v1508_v43  ;;  %627 = vst [vmem:[%s1175_s4 + $0xb] sm:$0x1] %v1508_v43  ;;  %v661_v10 = vmul.f32 1.3333334, %v1508_v43  ;;  %v701_v41 = vmul.f32 -0.33333334, %v1508_v43 }
 0x708   : > { %643 = vrot.lane.b32.xlu2 %v633_v54, %s1085_s5  ;;  %639 = vrot.lane.b32.xlu1 %v633_v54, %s1088_s8  ;;  %v637_v56 = vmul.f32 %v633_v54, %v1195_v8 }
 0x709   : > { %634 = vrot.lane.b32.xlu0 %v633_v54, %s1086_s6 }
 0x711   : > { %646 = vrot.lane.b32.xlu0 %v633_v54, %s1087_s7 }
 0x762   : > { %v644_v46 = vpop.permute.xlu2 %643 }
 0x763   : > { %v645_v62 = vmul.f32 %v644_v46, %v1199_v11 }
 0x77a   : > { %v640_v58 = vpop.permute.xlu1 %639 }
 0x77b   : > { %v635_v55 = vpop.permute.xlu0 %634  ;;  %v641_v53 = vmul.f32 %v640_v58, %v1203_v13 }
 0x77c   : > { %v636_v47 = vmul.f32 %v635_v55, %v1193_v7 }
 0x77e   : > { %v638_v51 = vadd.f32 %v637_v56, %v636_v47  ;;  %v958_v56 = vld [vmem:[#allocation10 + $0x2] sm:$0x1] }
 0x780   : > { %v642_v57 = vadd.f32 %v641_v53, %v638_v51  ;;  %v706_v51 = vstv %s705_s17 }
 0x783   : > { %v647_v61 = vpop.permute.xlu0 %646 }
 0x784   : > { %v648_v0 = vmul.f32 %v647_v61, %v1201_v12 }
 0x786   : > { %v649_v5 = vadd.f32 %v648_v0, %v645_v62  ;;  %v959_v62 = vld [vmem:[#allocation10 + $0x4] sm:$0x1]  ;;  %v960_v0 = vld [vmem:[#allocation10] sm:$0x1] }
 0x788   : > { %v650_v6 = vadd.f32 %v649_v5, %v642_v57 }
 0x78a   : > { %v651_v59 = vadd.f32 %v650_v6, %v631_v4  ;;  %v658_v21 = vmul.f32 %v650_v6, %v1214_v33  ;;  %v961_v4 = vld [vmem:[#allocation10 + $0x3] sm:$0x1] }
 0x78c   : > { %v652_v63 = vmul.f32 0.0026666666, %v651_v59  ;;  %v962_v59 = vld [vmem:[#allocation10 + $0x5] sm:$0x1] }
 0x78e   : > { %v654_v2 = vadd.f32 %v653_v14, %v652_v63  ;;  %v707_v14 = vmul.f32 %v962_v59, %v706_v51 }
 0x790   : > { %v656_v19 = vadd.f32 %v655_v16, %v654_v2 }
 0x792   : > { %v657_v3 = vmul.f32 %v656_v19, %v1212_v32 }
 0x794   : > { %v1529_v22 = vadd.f32 %v658_v21, %v657_v3 }
 0x796   : > { %v660_v23 = vmul.f32 0.0026666666, %v1529_v22  ;;  %v670_v15 = vmul.f32 0.004, %v1529_v22  ;;  %v731_v21 = vmul.f32 -0.33333334, %v1529_v22 }
 0x798   : > { %v662_v9 = vadd.f32 %v661_v10, %v660_v23 }
 0x79a   : > { %v1534_v18 = vadd.f32 %v663_v25, %v662_v9  ;;  %v963_v9 = vld [vmem:[#allocation10 + $0x6] sm:$0x1] }
 0x79c   : > { %v671_v27 = vadd.f32 %v670_v15, %v1534_v18  ;;  %665 = vst [vmem:[%s1175_s4 + $0xc] sm:$0x1] %v1534_v18  ;;  %v699_v17 = vmul.f32 1.3333334, %v1534_v18  ;;  %v964_v15 = vld [vmem:[#allocation10 + $0x7] sm:$0x1] }
 0x79e   : > { %681 = vrot.lane.b32.xlu0 %v671_v27, %s1085_s5  ;;  %677 = vrot.lane.b32.xlu2 %v671_v27, %s1088_s8  ;;  %v675_v29 = vmul.f32 %v671_v27, %v1195_v8 }
 0x79f   : > { %672 = vrot.lane.b32.xlu1 %v671_v27, %s1086_s6 }
 0x7a7   : > { %684 = vrot.lane.b32.xlu1 %v671_v27, %s1087_s7 }
 0x7f8   : > { %v678_v1 = vpop.permute.xlu2 %677 }
 0x7f9   : > { %v679_v37 = vmul.f32 %v678_v1, %v1203_v13 }
 0x810   : > { %v682_v31 = vpop.permute.xlu0 %681 }
 0x811   : > { %v673_v28 = vpop.permute.xlu1 %672  ;;  %v683_v26 = vmul.f32 %v682_v31, %v1199_v11  ;;  %v739_v31 = vmul.f32 -0.33333334, %v1534_v18 }
 0x812   : > { %v674_v20 = vmul.f32 %v673_v28, %v1193_v7  ;;  %v691_v7 = vmul.f32 1.3333334, %v1529_v22 }
 0x814   : > { %v676_v24 = vadd.f32 %v675_v29, %v674_v20 }
 0x816   : > { %v680_v30 = vadd.f32 %v679_v37, %v676_v24 }
 0x819   : > { %v685_v36 = vpop.permute.xlu1 %684 }
 0x81a   : > { %v686_v40 = vmul.f32 %v685_v36, %v1201_v12 }
 0x81c   : > { %v687_v44 = vadd.f32 %v686_v40, %v683_v26 }
 0x81e   : > { %v688_v45 = vadd.f32 %v687_v44, %v680_v30 }
 0x820   : > { %v689_v34 = vadd.f32 %v688_v45, %v669_v42  ;;  %v696_v11 = vmul.f32 %v688_v45, %v1214_v33  ;;  %v957_v33 = vld [vmem:[#allocation10 + $0x1] sm:$0x1]  ;;  %v744_v42 = vstv %s743_s22 }
 0x822   : > { %v690_v8 = vmul.f32 0.0026666666, %v689_v34 }
 0x824   : > { %v692_v38 = vadd.f32 %v691_v7, %v690_v8 }
 0x826   : > { %v694_v50 = vadd.f32 %v693_v48, %v692_v38  ;;  %v745_v48 = vmul.f32 %v962_v59, %v744_v42 }
 0x828   : > { %v695_v13 = vmul.f32 %v694_v50, %v1212_v32 }
 0x82a   : > { %v1555_v12 = vadd.f32 %v696_v11, %v695_v13 }
 0x82c   : > { %v698_v39 = vmul.f32 0.0026666666, %v1555_v12  ;;  %v708_v49 = vmul.f32 0.004, %v1555_v12  ;;  %v729_v19 = vmul.f32 1.3333334, %v1555_v12 }
 0x82e   : > { %v700_v52 = vadd.f32 %v699_v17, %v698_v39  ;;  %v769_v39 = vmul.f32 -0.33333334, %v1555_v12 }
 0x830   : > { %v1560_v54 = vadd.f32 %v701_v41, %v700_v52 }
 0x832   : > { %v709_v55 = vadd.f32 %v708_v49, %v1560_v54  ;;  %703 = vst [vmem:[%s1175_s4 + $0xd] sm:$0x1] %v1560_v54  ;;  %v737_v20 = vmul.f32 1.3333334, %v1560_v54 }
 0x834   : > { %719 = vrot.lane.b32.xlu1 %v709_v55, %s1085_s5  ;;  %715 = vrot.lane.b32.xlu0 %v709_v55, %s1088_s8  ;;  %v713_v46 = vmul.f32 %v958_v56, %v709_v55 }
 0x835   : > { %710 = vrot.lane.b32.xlu2 %v709_v55, %s1086_s6 }
 0x83d   : > { %722 = vrot.lane.b32.xlu2 %v709_v55, %s1087_s7 }
 0x88f   : > { %v711_v32 = vpop.permute.xlu2 %710 }
 0x890   : > { %v712_v43 = vmul.f32 %v957_v33, %v711_v32 }
 0x892   : > { %v714_v61 = vadd.f32 %v713_v46, %v712_v43 }
 0x897   : > { %v723_v47 = vpop.permute.xlu2 %722 }
 0x898   : > { %v724_v53 = vmul.f32 %v959_v62, %v723_v47  ;;  %v777_v47 = vmul.f32 -0.33333334, %v1560_v54 }
 0x8a6   : > { %v720_v58 = vpop.permute.xlu1 %719  ;;  %v716_v60 = vpop.permute.xlu0 %715 }
 0x8a7   : > { %v721_v57 = vmul.f32 %v960_v0, %v720_v58  ;;  %v717_v5 = vmul.f32 %v961_v4, %v716_v60 }
 0x8a9   : > { %v725_v6 = vadd.f32 %v724_v53, %v721_v57  ;;  %v718_v63 = vadd.f32 %v717_v5, %v714_v61 }
 0x8ab   : > { %v726_v16 = vadd.f32 %v725_v6, %v718_v63 }
 0x8ad   : > { %v727_v2 = vadd.f32 %v726_v16, %v707_v14  ;;  %v734_v27 = vmul.f32 %v964_v15, %v726_v16 }
 0x8af   : > { %v728_v3 = vmul.f32 0.0026666666, %v727_v2 }
 0x8b1   : > { %v730_v10 = vadd.f32 %v729_v19, %v728_v3 }
 0x8b3   : > { %v732_v23 = vadd.f32 %v731_v21, %v730_v10 }
 0x8b5   : > { %v733_v25 = vmul.f32 %v963_v9, %v732_v23 }
 0x8b7   : > { %v735_v28 = vadd.f32 %v734_v27, %v733_v25 }
 0x8b9   : > { %v736_v29 = vmul.f32 0.0026666666, %v735_v28  ;;  %783 = vst [vmem:[#allocation5] sm:$0x1] %v735_v28  ;;  %v746_v35 = vmul.f32 0.004, %v735_v28 }
 0x8ba   : > { %v767_v11 = vmul.f32 1.3333334, %v735_v28 }
 0x8bb   : > { %v738_v1 = vadd.f32 %v737_v20, %v736_v29 }
 0x8bd   : > { %v740_v24 = vadd.f32 %v739_v31, %v738_v1 }
 0x8bf   : > { %v747_v36 = vadd.f32 %v746_v35, %v740_v24  ;;  %782 = vst [vmem:[#allocation4] sm:$0x1] %v740_v24 }
 0x8c0   : > { %741 = vst [vmem:[%s1175_s4 + $0xe] sm:$0x1] %v740_v24 }
 0x8c1   : > { %757 = vrot.lane.b32.xlu2 %v747_v36, %s1085_s5  ;;  %753 = vrot.lane.b32.xlu1 %v747_v36, %s1088_s8  ;;  %v751_v26 = vmul.f32 %v958_v56, %v747_v36  ;;  %s797_s8 = sshll.u32 %s1175_s4, 4  ;;  %s798_s8 = int_to_ptr.vmem [resolvable:$true] %s797_s8 }
 0x8c2   : > { %748 = vrot.lane.b32.xlu0 %v747_v36, %s1086_s6 }
 0x8ca   : > { %760 = vrot.lane.b32.xlu0 %v747_v36, %s1087_s7  ;;  %s796_s7 = scalar_lea.hbm %s1620_s2, %s1190_s14 }
 0x8cb   : > { %s799_s23 = sshll.u32 %s796_s7, 4  ;;  %s800_s23 = int_to_ptr.hbm [resolvable:$true] %s799_s23 }
 0x8cc   : > { %s1024_s25 = sshra.s32 %s800_s23, 4  ;;  %s1025_s25 = int_to_ptr.hbm [resolvable:$true] %s1024_s25 }
 0x8cd   : > { %s1026_s14 = scalar_lea.hbm %s1025_s25, 16  ;;  %p1031_p3 = scmp.lt.s32.totalorder %s1025_s25, %s1620_s2 }
 0x8ce   : > { %p1027_p0 = scmp.ne.s32.totalorder %s1025_s25, %s1026_s14  ;;  %p1032_p4 = scmp.lt.s32.totalorder %s1030_s28, %s1026_s14 }
 0x8d0   : > { %p1028_p1 = pnand %p1027_p0, %p1144_p5  ;;  %p1033_p7 = por %p1032_p4, %p1031_p3 }
 0x8d2   : > { %p1029_p2 = pneg %p1028_p1 }
 0x8d4   : > { %p1034_p8 = pnand %p1033_p7, %p1029_p2 }
 0x91b   : > { %v758_v40 = vpop.permute.xlu2 %757 }
 0x91c   : > { %v759_v45 = vmul.f32 %v960_v0, %v758_v40 }
 0x933   : > { %v754_v18 = vpop.permute.xlu1 %753 }
 0x934   : > { %v749_v22 = vpop.permute.xlu0 %748  ;;  %v755_v34 = vmul.f32 %v961_v4, %v754_v18 }
 0x935   : > { %v750_v37 = vmul.f32 %v957_v33, %v749_v22  ;;  %v775_v33 = vmul.f32 1.3333334, %v740_v24 }
 0x937   : > { %v752_v30 = vadd.f32 %v751_v26, %v750_v37 }
 0x939   : > { %v756_v8 = vadd.f32 %v755_v34, %v752_v30 }
 0x93c   : > { %v761_v44 = vpop.permute.xlu0 %760 }
 0x93d   : > { %v762_v7 = vmul.f32 %v959_v62, %v761_v44 }
 0x93f   : > { %v763_v38 = vadd.f32 %v762_v7, %v759_v45 }
 0x941   : > { %v764_v50 = vadd.f32 %v763_v38, %v756_v8 }
 0x943   : > { %v765_v13 = vadd.f32 %v764_v50, %v745_v48  ;;  %v772_v55 = vmul.f32 %v964_v15, %v764_v50 }
 0x945   : > { %v766_v17 = vmul.f32 0.0026666666, %v765_v13 }
 0x947   : > { %v768_v52 = vadd.f32 %v767_v11, %v766_v17 }
 0x949   : > { %v770_v41 = vadd.f32 %v769_v39, %v768_v52 }
 0x94b   : > { %v771_v49 = vmul.f32 %v963_v9, %v770_v41 }
 0x94d   : > { %v773_v32 = vadd.f32 %v772_v55, %v771_v49 }
 0x94f   : > { %v774_v43 = vmul.f32 0.0026666666, %v773_v32  ;;  %781 = vst [vmem:[#allocation3] sm:$0x1] %v773_v32 }
 0x951   : > { %v776_v12 = vadd.f32 %v775_v33, %v774_v43 }
 0x953   : > { %v778_v56 = vadd.f32 %v777_v47, %v776_v12 }
 0x955   : > { %779 = vst [vmem:[%s1175_s4 + $0xf] sm:$0x1] %v778_v56 }
 0x956   : > { %780 = vst [vmem:[#allocation2] sm:$0x1] %v778_v56 }
 0x957   : > { %1037 = shalt.err (!%p1034_p8)
}
 0x958   : > { %s1089_s30 = smov 128   ;;  %s1090_s4 = smov 8  }
 0x959   : > { %898 = dma.vmem_to_hbm [thread:$0]  (%p1144_p5), %s798_s8, 256, %s800_s23, %s785_s24, %s1089_s30, %s1089_s30, %s1090_s4  }
 0x95a PF: > { %p915_p9 = scmp.ge.s32.totalorder %s1080_s12, 2  ;;  %s814_s16 = sand.u32 1, %s1068_s9  }
 0x95b   : > { %s815_s13 = scalar_lea.sflag [#allocation8], %s814_s16 }
 0x95c   : > { %p908_p10 = pnand %p915_p9, %p1148_p6 }
 0x95e   : > { %p909_p11 = pneg %p908_p10 }
 0x960   : > { %1063 = dma.done.wait (%p909_p11), %s815_s13, 256  }
 0x961   : > { %1065 = vsyncadd (%p909_p11), %s815_s13, 4294967040  ;;  %p14_p12 = scmp.ge.s32.totalorder %s1131_s15, 5   ;;  %s1623_s9 = smov %s1072_s10 }
 0x962   : > { %s1624_s10 = smov %s1076_s11  ;;  %s1625_s11 = smov %s1142_s18 }
 0x963   : > { %s1626_s12 = smov %s1131_s15  ;;  %16 = sbr.rel (!%p14_p12) target bundleno = 5 (0x5), region = 74 }
 0x968   :  { %821 = vsyncpa [#allocation7], 1 }
 0x969   :  { %823 = vsyncpa [#allocation7 + $0x1], 1 }
 0x96a   :  { %824 = vsyncpa [#allocation8], 1 }
 0x96b   :  { %826 = vsyncpa [#allocation8 + $0x1], 1 }
 0x96c   :  { %827 = vsyncpa [#allocation9], 1 }
 0x96d   :  { %829 = vsyncpa [#allocation9 + $0x1], 1 }

</bundles_post_ra>
